<compile_context>
chip_gen: v7x
topology: tpu7x:2x2x1
jax: 0.10.0
libtpu: 0.0.40
codegen_flags: <defaults>
</compile_context>

<pallas_src>
import functools

import jax
import jax.numpy as jnp
from jax.experimental import pallas as pl
from jax.experimental.pallas import tpu as pltpu


# ------------------------------ fused kernel --------------------------------

def _d_block_kernel(high_ref, low_ref, wcu_ref, bcu_ref, shuf_ref, shift_ref,
                    ws0_ref, bs0_ref, ws1_ref, bs1_ref, ws2_ref, bs2_ref,
                    out_ref, *, Ch, HW, M2):
    f32 = jnp.float32

    # folded d_block_c + d_block_up: all four 2x2-deconv taps in one matmul
    #   (4*Ch, Cin) @ (Cin, H*W) + (4*Ch, 1)
    up4 = jnp.dot(wcu_ref[...], high_ref[...], preferred_element_type=f32)
    up4 = up4 + bcu_ref[...]

    # in-kernel 2x2 pixel shuffle: per-tap column permutation with a constant
    # 0/1 matrix, accumulated into the lane-dense (Ch, 2H*2W) upsampled map.
    up = jnp.zeros((Ch, M2), f32)
    for t in range(4):
        tap = up4[t * Ch:(t + 1) * Ch, :]                    # (Ch, HW)
        perm = shuf_ref[t * HW:(t + 1) * HW, :]              # (HW, M2)
        up = up + jnp.dot(tap, perm, preferred_element_type=f32)

    # d_block_s[0]: fused residual add + 1x1 conv.
    z = jnp.dot(ws0_ref[...], up + low_ref[...], preferred_element_type=f32)
    z = z + bs0_ref[...]                                     # (Cb, M2)

    # d_block_s[1]: 3x3 conv (pad 1) as a single K=9*Cb im2col matmul.  The
    # nine shifted-and-zero-padded copies of z come from constant shift/mask
    # matrices, so no strided lane access or in-kernel padding is needed.
    shifted = []
    for k in range(9):
        a_k = shift_ref[k * M2:(k + 1) * M2, :]              # (M2, M2)
        shifted.append(jnp.dot(z, a_k, preferred_element_type=f32))
    patches = jnp.concatenate(shifted, axis=0)               # (9*Cb, M2)
    s1 = jnp.dot(ws1_ref[...], patches, preferred_element_type=f32)
    s1 = s1 + bs1_ref[...]                                   # (Cb, M2)

    # d_block_s[2]: final 1x1 conv, lane-dense store.
    out_ref[...] = (jnp.dot(ws2_ref[...], s1, preferred_element_type=f32)
                    + bs2_ref[...])                          # (Ch, M2)


# -------------------------- constant matrix builders ------------------------

def _shuffle_matrix(H, W):
    """(4*HW, 4*HW) 0/1 matrix: row t*HW + h*W + w -> column (2h+a)*2W + 2w+b,
    with tap t = 2a + b.  Implements the stride-2 ConvTranspose pixel shuffle."""
    HW, W2 = H * W, 2 * W
    M2 = 4 * HW
    r = jnp.arange(4 * HW)
    t, hw = r // HW, r % HW
    a, b = t // 2, t % 2
    h, w = hw // W, hw % W
    col = (2 * h + a) * W2 + (2 * w + b)
    return (col[:, None] == jnp.arange(M2)[None, :]).astype(jnp.float32)


def _shift_matrices(H2, W2):
    """(9*M2, M2) stacked 0/1 matrices A_k with (z @ A_k)[:, m] = z[:, m+s] when
    the shifted position is inside the image, else 0 (zero-padding semantics)."""
    M2 = H2 * W2
    m = jnp.arange(M2)
    y, x = m // W2, m % W2
    j = jnp.arange(M2)
    mats = []
    for dy in (-1, 0, 1):
        for dx in (-1, 0, 1):
            valid = (y + dy >= 0) & (y + dy < H2) & (x + dx >= 0) & (x + dx < W2)
            src = m + dy * W2 + dx
            a = (j[:, None] == src[None, :]) & valid[None, :]
            mats.append(a.astype(jnp.float32))
    return jnp.concatenate(mats, axis=0)


# --------------------------- D_Block forward (host) --------------------------

def d_block_forward(high_nchw, low_nchw, p):
    N, Cin, H, W = high_nchw.shape
    Ch = Cin // 2
    Cb = p['ws0'].shape[0]
    H2, W2 = 2 * H, 2 * W
    HW, M2 = H * W, H2 * W2

    high3 = high_nchw.reshape(N, Cin, HW)     # zero-copy metadata reshapes
    low3 = low_nchw.reshape(N, Ch, M2)
    shuf = _shuffle_matrix(H, W)              # (4*HW, M2) constant
    shift = _shift_matrices(H2, W2)           # (9*M2, M2) constant

    kern = functools.partial(_d_block_kernel, Ch=Ch, HW=HW, M2=M2)

    def whole(shape):
        return pl.BlockSpec(shape, lambda n, _s=len(shape): (0,) * _s)

    def batched(c, m):
        return pl.BlockSpec((None, c, m), lambda n: (n, 0, 0))

    out3 = pl.pallas_call(
        kern,
        out_shape=jax.ShapeDtypeStruct((N, Ch, M2), jnp.float32),
        grid=(N,),
        in_specs=[
            batched(Cin, HW),                 # high (per-image)
            batched(Ch, M2),                  # low  (per-image)
            whole((4 * Ch, Cin)),             # folded c+up weight
            whole((4 * Ch, 1)),               # folded c+up bias
            whole((4 * HW, M2)),              # pixel-shuffle permutation
            whole((9 * M2, M2)),              # 3x3 shift/mask matrices
            whole((Cb, Ch)), whole((Cb, 1)),          # s0 (1x1)
            whole((Cb, 9 * Cb)), whole((Cb, 1)),      # s1 (3x3, im2col layout)
            whole((Ch, Cb)), whole((Ch, 1)),          # s2 (1x1)
        ],
        out_specs=batched(Ch, M2),
        compiler_params=pltpu.CompilerParams(dimension_semantics=("parallel",)),
    )(high3, low3, p['w_cu'], p['b_cu'], shuf, shift,
      p['ws0'], p['bs0'], p['ws1f'], p['bs1'], p['ws2'], p['bs2'])

    return out3.reshape(N, Ch, H2, W2)        # zero-copy


# ------------------------ parameters (deterministic) -------------------------

def init_params(key, in_ch, block_ch):
    Ch = in_ch // 2
    ks = jax.random.split(key, 10)

    def u(k, shape, fan_in):
        bound = 1.0 / jnp.sqrt(float(fan_in))
        return jax.random.uniform(k, shape, jnp.float32, -bound, bound)

    # PyTorch-shaped parameters (used by the reference)
    pt = dict(
        wc_pt=u(ks[0], (Ch, in_ch, 1, 1), in_ch),
        bc=u(ks[1], (Ch,), in_ch),
        wup_pt=u(ks[2], (Ch, Ch, 2, 2), Ch * 4),
        bup=u(ks[3], (Ch,), Ch * 4),
        ws0_pt=u(ks[4], (block_ch, Ch, 1, 1), Ch),
        bs0=u(ks[5], (block_ch,), Ch),
        ws1_pt=u(ks[6], (block_ch, block_ch, 3, 3), block_ch * 9),
        bs1=u(ks[7], (block_ch,), block_ch * 9),
        ws2_pt=u(ks[8], (Ch, block_ch, 1, 1), block_ch),
        bs2=u(ks[9], (Ch,), block_ch),
    )

    # fold d_block_c (1x1) + d_block_up (ConvT 2x2/2) into one per-tap matmul
    wc = pt['wc_pt'][:, :, 0, 0]                       # (Ch, Cin)
    w_blocks, b_blocks = [], []
    for a in range(2):
        for b in range(2):
            wt = pt['wup_pt'][:, :, a, b]              # (Ci=Ch, Co=Ch)
            w_blocks.append(wt.T @ wc)                 # (Ch, Cin)
            b_blocks.append(wt.T @ pt['bc'] + pt['bup'])

    kp = dict(
        w_cu=jnp.concatenate(w_blocks, axis=0),                    # (4*Ch, Cin)
        b_cu=jnp.concatenate(b_blocks, axis=0)[:, None],           # (4*Ch, 1)
        ws0=pt['ws0_pt'][:, :, 0, 0],                              # (Cb, Ch)
        bs0=pt['bs0'][:, None],
        ws1f=jnp.transpose(pt['ws1_pt'], (0, 2, 3, 1)).reshape(block_ch,
                                                               9 * block_ch),
        bs1=pt['bs1'][:, None],
        ws2=pt['ws2_pt'][:, :, 0, 0],                              # (Ch, Cb)
        bs2=pt['bs2'][:, None],
    )
    return kp, pt


# -------------------------- pure-JAX NCHW reference --------------------------

def ref_forward(high, low, p):
    def conv1x1_ref(x, w, b):
        return jnp.einsum('nchw,oc->nohw', x, w[:, :, 0, 0]) + b[None, :, None, None]

    def convT_ref(x, w, b):
        N, Ci, H, W = x.shape
        Co = w.shape[1]
        out = jnp.zeros((N, Co, 2 * H, 2 * W), x.dtype)
        for kh in range(2):
            for kw in range(2):
                y = jnp.einsum('nchw,co->nohw', x, w[:, :, kh, kw])
                out = out.at[:, :, kh::2, kw::2].set(y)
        return out + b[None, :, None, None]

    def conv3x3_ref(x, w, b):
        xp = jnp.pad(x, ((0, 0), (0, 0), (1, 1), (1, 1)))
        N, Ci, H, W = x.shape
        Co = w.shape[0]
        acc = jnp.zeros((N, Co, H, W), x.dtype)
        for kh in range(3):
            for kw in range(3):
                acc = acc + jnp.einsum('nchw,oc->nohw',
                                       xp[:, :, kh:kh + H, kw:kw + W],
                                       w[:, :, kh, kw])
        return acc + b[None, :, None, None]

    c = conv1x1_ref(high, p['wc_pt'], p['bc'])
    up = convT_ref(c, p['wup_pt'], p['bup'])
    s = conv1x1_ref(up + low, p['ws0_pt'], p['bs0'])
    s = conv3x3_ref(s, p['ws1_pt'], p['bs1'])
    s = conv1x1_ref(s, p['ws2_pt'], p['bs2'])
    return s


# ----------------------------------- main ------------------------------------

if __name__ == "__main__":
    in_ch, block_ch = 4, 8
    N, H, W = 2, 8, 8
    Ch = in_ch // 2

    key = jax.random.PRNGKey(0)
    k_high, k_low, k_params = jax.random.split(key, 3)
    high = jax.random.normal(k_high, (N, in_ch, H, W), jnp.float32)
    low = jax.random.normal(k_low, (N, Ch, 2 * H, 2 * W), jnp.float32)

    params, params_pt = init_params(k_params, in_ch, block_ch)

    out = jax.jit(d_block_forward)(high, low, params)
    out = jax.block_until_ready(out)

    ref = ref_forward(high, low, params_pt)
    assert out.shape == (N, Ch, 2 * H, 2 * W), out.shape
    assert jnp.allclose(out, ref, rtol=2e-3, atol=2e-3), \
        float(jnp.max(jnp.abs(out - ref)))

    print("KERNEL_OK")
</pallas_src>

<mosaic_0001>
module attributes {stable_mosaic.version = 11 : i64} {
  func.func @_d_block_kernel(%arg0: i32, %arg1: memref<1x4x64xf32, #tpu.memory_space<vmem>>, %arg2: memref<1x2x256xf32, #tpu.memory_space<vmem>>, %arg3: memref<8x4xf32, #tpu.memory_space<vmem>>, %arg4: memref<8x1xf32, #tpu.memory_space<vmem>>, %arg5: memref<256x256xf32, #tpu.memory_space<vmem>>, %arg6: memref<2304x256xf32, #tpu.memory_space<vmem>>, %arg7: memref<8x2xf32, #tpu.memory_space<vmem>>, %arg8: memref<8x1xf32, #tpu.memory_space<vmem>>, %arg9: memref<8x72xf32, #tpu.memory_space<vmem>>, %arg10: memref<8x1xf32, #tpu.memory_space<vmem>>, %arg11: memref<2x8xf32, #tpu.memory_space<vmem>>, %arg12: memref<2x1xf32, #tpu.memory_space<vmem>>, %arg13: memref<1x2x256xf32, #tpu.memory_space<vmem>>) attributes {dimension_semantics = [#tpu.dimension_semantics<parallel>], iteration_bounds = array<i64: 2>, scalar_prefetch = 0 : i64, scratch_operands = 0 : i64, tpu.core_type = #tpu.core_type<tc>, window_params = [{transform_indices = @transform_0, window_bounds = array<i64: 1, 4, 64>}, {transform_indices = @transform_1, window_bounds = array<i64: 1, 2, 256>}, {pipeline_mode = #tpu.pipeline_mode<synchronous>, transform_indices = @transform_2, window_bounds = array<i64: 8, 4>}, {pipeline_mode = #tpu.pipeline_mode<synchronous>, transform_indices = @transform_3, window_bounds = array<i64: 8, 1>}, {pipeline_mode = #tpu.pipeline_mode<synchronous>, transform_indices = @transform_4, window_bounds = array<i64: 256, 256>}, {pipeline_mode = #tpu.pipeline_mode<synchronous>, transform_indices = @transform_5, window_bounds = array<i64: 2304, 256>}, {pipeline_mode = #tpu.pipeline_mode<synchronous>, transform_indices = @transform_6, window_bounds = array<i64: 8, 2>}, {pipeline_mode = #tpu.pipeline_mode<synchronous>, transform_indices = @transform_7, window_bounds = array<i64: 8, 1>}, {pipeline_mode = #tpu.pipeline_mode<synchronous>, transform_indices = @transform_8, window_bounds = array<i64: 8, 72>}, {pipeline_mode = #tpu.pipeline_mode<synchronous>, transform_indices = @transform_9, window_bounds = array<i64: 8, 1>}, {pipeline_mode = #tpu.pipeline_mode<synchronous>, transform_indices = @transform_10, window_bounds = array<i64: 2, 8>}, {pipeline_mode = #tpu.pipeline_mode<synchronous>, transform_indices = @transform_11, window_bounds = array<i64: 2, 1>}, {transform_indices = @transform_12, window_bounds = array<i64: 1, 2, 256>}]} {
    %c0 = arith.constant 0 : index
    %c0_0 = arith.constant 0 : index
    %0 = vector.load %arg3[%c0, %c0_0] : memref<8x4xf32, #tpu.memory_space<vmem>>, vector<8x4xf32>
    %c0_1 = arith.constant 0 : index
    %c0_2 = arith.constant 0 : index
    %c0_3 = arith.constant 0 : index
    %1 = vector.load %arg1[%c0_1, %c0_2, %c0_3] : memref<1x4x64xf32, #tpu.memory_space<vmem>>, vector<1x4x64xf32>
    %2 = vector.shape_cast %1 : vector<1x4x64xf32> to vector<4x64xf32>
    %cst = arith.constant dense<0.000000e+00> : vector<8x64xf32>
    %3 = tpu.matmul %0, %2, %cst {dimension_numbers = #tpu.dot_dimension_numbers<[1], [0], [0], [1], [0, 0, 1, 1], [], []>} : vector<8x4xf32>, vector<4x64xf32>, vector<8x64xf32> -> vector<8x64xf32>
    %c0_4 = arith.constant 0 : index
    %c0_5 = arith.constant 0 : index
    %4 = vector.load %arg4[%c0_4, %c0_5] : memref<8x1xf32, #tpu.memory_space<vmem>>, vector<8x1xf32>
    %5 = vector.broadcast %4 : vector<8x1xf32> to vector<8x64xf32>
    %6 = arith.addf %3, %5 : vector<8x64xf32>
    %cst_6 = arith.constant 0.000000e+00 : f32
    %7 = vector.broadcast %cst_6 : f32 to vector<2x256xf32>
    %8 = vector.extract_strided_slice %6 {offsets = [0, 0], sizes = [2, 64], strides = [1, 1]} : vector<8x64xf32> to vector<2x64xf32>
    %c0_7 = arith.constant 0 : index
    %c0_8 = arith.constant 0 : index
    %9 = vector.load %arg5[%c0_7, %c0_8] : memref<256x256xf32, #tpu.memory_space<vmem>>, vector<64x256xf32>
    %cst_9 = arith.constant dense<0.000000e+00> : vector<2x256xf32>
    %10 = tpu.matmul %8, %9, %cst_9 {dimension_numbers = #tpu.dot_dimension_numbers<[1], [0], [0], [1], [0, 0, 1, 1], [], []>} : vector<2x64xf32>, vector<64x256xf32>, vector<2x256xf32> -> vector<2x256xf32>
    %11 = arith.addf %7, %10 : vector<2x256xf32>
    %12 = vector.extract_strided_slice %6 {offsets = [2, 0], sizes = [2, 64], strides = [1, 1]} : vector<8x64xf32> to vector<2x64xf32>
    %c64 = arith.constant 64 : index
    %c0_10 = arith.constant 0 : index
    %13 = vector.load %arg5[%c64, %c0_10] : memref<256x256xf32, #tpu.memory_space<vmem>>, vector<64x256xf32>
    %cst_11 = arith.constant dense<0.000000e+00> : vector<2x256xf32>
    %14 = tpu.matmul %12, %13, %cst_11 {dimension_numbers = #tpu.dot_dimension_numbers<[1], [0], [0], [1], [0, 0, 1, 1], [], []>} : vector<2x64xf32>, vector<64x256xf32>, vector<2x256xf32> -> vector<2x256xf32>
    %15 = arith.addf %11, %14 : vector<2x256xf32>
    %16 = vector.extract_strided_slice %6 {offsets = [4, 0], sizes = [2, 64], strides = [1, 1]} : vector<8x64xf32> to vector<2x64xf32>
    %c128 = arith.constant 128 : index
    %c0_12 = arith.constant 0 : index
    %17 = vector.load %arg5[%c128, %c0_12] : memref<256x256xf32, #tpu.memory_space<vmem>>, vector<64x256xf32>
    %cst_13 = arith.constant dense<0.000000e+00> : vector<2x256xf32>
    %18 = tpu.matmul %16, %17, %cst_13 {dimension_numbers = #tpu.dot_dimension_numbers<[1], [0], [0], [1], [0, 0, 1, 1], [], []>} : vector<2x64xf32>, vector<64x256xf32>, vector<2x256xf32> -> vector<2x256xf32>
    %19 = arith.addf %15, %18 : vector<2x256xf32>
    %20 = vector.extract_strided_slice %6 {offsets = [6, 0], sizes = [2, 64], strides = [1, 1]} : vector<8x64xf32> to vector<2x64xf32>
    %c192 = arith.constant 192 : index
    %c0_14 = arith.constant 0 : index
    %21 = vector.load %arg5[%c192, %c0_14] : memref<256x256xf32, #tpu.memory_space<vmem>>, vector<64x256xf32>
    %cst_15 = arith.constant dense<0.000000e+00> : vector<2x256xf32>
    %22 = tpu.matmul %20, %21, %cst_15 {dimension_numbers = #tpu.dot_dimension_numbers<[1], [0], [0], [1], [0, 0, 1, 1], [], []>} : vector<2x64xf32>, vector<64x256xf32>, vector<2x256xf32> -> vector<2x256xf32>
    %23 = arith.addf %19, %22 : vector<2x256xf32>
    %c0_16 = arith.constant 0 : index
    %c0_17 = arith.constant 0 : index
    %24 = vector.load %arg7[%c0_16, %c0_17] : memref<8x2xf32, #tpu.memory_space<vmem>>, vector<8x2xf32>
    %c0_18 = arith.constant 0 : index
    %c0_19 = arith.constant 0 : index
    %c0_20 = arith.constant 0 : index
    %25 = vector.load %arg2[%c0_18, %c0_19, %c0_20] : memref<1x2x256xf32, #tpu.memory_space<vmem>>, vector<1x2x256xf32>
    %26 = vector.shape_cast %25 : vector<1x2x256xf32> to vector<2x256xf32>
    %27 = arith.addf %23, %26 : vector<2x256xf32>
    %cst_21 = arith.constant dense<0.000000e+00> : vector<8x256xf32>
    %28 = tpu.matmul %24, %27, %cst_21 {dimension_numbers = #tpu.dot_dimension_numbers<[1], [0], [0], [1], [0, 0, 1, 1], [], []>} : vector<8x2xf32>, vector<2x256xf32>, vector<8x256xf32> -> vector<8x256xf32>
    %c0_22 = arith.constant 0 : index
    %c0_23 = arith.constant 0 : index
    %29 = vector.load %arg8[%c0_22, %c0_23] : memref<8x1xf32, #tpu.memory_space<vmem>>, vector<8x1xf32>
    %30 = vector.broadcast %29 : vector<8x1xf32> to vector<8x256xf32>
    %31 = arith.addf %28, %30 : vector<8x256xf32>
    %c0_24 = arith.constant 0 : index
    %c0_25 = arith.constant 0 : index
    %32 = vector.load %arg6[%c0_24, %c0_25] : memref<2304x256xf32, #tpu.memory_space<vmem>>, vector<256x256xf32>
    %cst_26 = arith.constant dense<0.000000e+00> : vector<8x256xf32>
    %33 = tpu.matmul %31, %32, %cst_26 {dimension_numbers = #tpu.dot_dimension_numbers<[1], [0], [0], [1], [0, 0, 1, 1], [], []>} : vector<8x256xf32>, vector<256x256xf32>, vector<8x256xf32> -> vector<8x256xf32>
    %c256 = arith.constant 256 : index
    %c0_27 = arith.constant 0 : index
    %34 = vector.load %arg6[%c256, %c0_27] : memref<2304x256xf32, #tpu.memory_space<vmem>>, vector<256x256xf32>
    %cst_28 = arith.constant dense<0.000000e+00> : vector<8x256xf32>
    %35 = tpu.matmul %31, %34, %cst_28 {dimension_numbers = #tpu.dot_dimension_numbers<[1], [0], [0], [1], [0, 0, 1, 1], [], []>} : vector<8x256xf32>, vector<256x256xf32>, vector<8x256xf32> -> vector<8x256xf32>
    %c512 = arith.constant 512 : index
    %c0_29 = arith.constant 0 : index
    %36 = vector.load %arg6[%c512, %c0_29] : memref<2304x256xf32, #tpu.memory_space<vmem>>, vector<256x256xf32>
    %cst_30 = arith.constant dense<0.000000e+00> : vector<8x256xf32>
    %37 = tpu.matmul %31, %36, %cst_30 {dimension_numbers = #tpu.dot_dimension_numbers<[1], [0], [0], [1], [0, 0, 1, 1], [], []>} : vector<8x256xf32>, vector<256x256xf32>, vector<8x256xf32> -> vector<8x256xf32>
    %c768 = arith.constant 768 : index
    %c0_31 = arith.constant 0 : index
    %38 = vector.load %arg6[%c768, %c0_31] : memref<2304x256xf32, #tpu.memory_space<vmem>>, vector<256x256xf32>
    %cst_32 = arith.constant dense<0.000000e+00> : vector<8x256xf32>
    %39 = tpu.matmul %31, %38, %cst_32 {dimension_numbers = #tpu.dot_dimension_numbers<[1], [0], [0], [1], [0, 0, 1, 1], [], []>} : vector<8x256xf32>, vector<256x256xf32>, vector<8x256xf32> -> vector<8x256xf32>
    %c1024 = arith.constant 1024 : index
    %c0_33 = arith.constant 0 : index
    %40 = vector.load %arg6[%c1024, %c0_33] : memref<2304x256xf32, #tpu.memory_space<vmem>>, vector<256x256xf32>
    %cst_34 = arith.constant dense<0.000000e+00> : vector<8x256xf32>
    %41 = tpu.matmul %31, %40, %cst_34 {dimension_numbers = #tpu.dot_dimension_numbers<[1], [0], [0], [1], [0, 0, 1, 1], [], []>} : vector<8x256xf32>, vector<256x256xf32>, vector<8x256xf32> -> vector<8x256xf32>
    %c1280 = arith.constant 1280 : index
    %c0_35 = arith.constant 0 : index
    %42 = vector.load %arg6[%c1280, %c0_35] : memref<2304x256xf32, #tpu.memory_space<vmem>>, vector<256x256xf32>
    %cst_36 = arith.constant dense<0.000000e+00> : vector<8x256xf32>
    %43 = tpu.matmul %31, %42, %cst_36 {dimension_numbers = #tpu.dot_dimension_numbers<[1], [0], [0], [1], [0, 0, 1, 1], [], []>} : vector<8x256xf32>, vector<256x256xf32>, vector<8x256xf32> -> vector<8x256xf32>
    %c1536 = arith.constant 1536 : index
    %c0_37 = arith.constant 0 : index
    %44 = vector.load %arg6[%c1536, %c0_37] : memref<2304x256xf32, #tpu.memory_space<vmem>>, vector<256x256xf32>
    %cst_38 = arith.constant dense<0.000000e+00> : vector<8x256xf32>
    %45 = tpu.matmul %31, %44, %cst_38 {dimension_numbers = #tpu.dot_dimension_numbers<[1], [0], [0], [1], [0, 0, 1, 1], [], []>} : vector<8x256xf32>, vector<256x256xf32>, vector<8x256xf32> -> vector<8x256xf32>
    %c1792 = arith.constant 1792 : index
    %c0_39 = arith.constant 0 : index
    %46 = vector.load %arg6[%c1792, %c0_39] : memref<2304x256xf32, #tpu.memory_space<vmem>>, vector<256x256xf32>
    %cst_40 = arith.constant dense<0.000000e+00> : vector<8x256xf32>
    %47 = tpu.matmul %31, %46, %cst_40 {dimension_numbers = #tpu.dot_dimension_numbers<[1], [0], [0], [1], [0, 0, 1, 1], [], []>} : vector<8x256xf32>, vector<256x256xf32>, vector<8x256xf32> -> vector<8x256xf32>
    %c2048 = arith.constant 2048 : index
    %c0_41 = arith.constant 0 : index
    %48 = vector.load %arg6[%c2048, %c0_41] : memref<2304x256xf32, #tpu.memory_space<vmem>>, vector<256x256xf32>
    %cst_42 = arith.constant dense<0.000000e+00> : vector<8x256xf32>
    %49 = tpu.matmul %31, %48, %cst_42 {dimension_numbers = #tpu.dot_dimension_numbers<[1], [0], [0], [1], [0, 0, 1, 1], [], []>} : vector<8x256xf32>, vector<256x256xf32>, vector<8x256xf32> -> vector<8x256xf32>
    %50 = tpu.concatenate %33, %35, %37, %39, %41, %43, %45, %47, %49 in 0 : vector<8x256xf32>, vector<8x256xf32>, vector<8x256xf32>, vector<8x256xf32>, vector<8x256xf32>, vector<8x256xf32>, vector<8x256xf32>, vector<8x256xf32>, vector<8x256xf32> -> vector<72x256xf32>
    %c0_43 = arith.constant 0 : index
    %c0_44 = arith.constant 0 : index
    %51 = vector.load %arg9[%c0_43, %c0_44] : memref<8x72xf32, #tpu.memory_space<vmem>>, vector<8x72xf32>
    %cst_45 = arith.constant dense<0.000000e+00> : vector<8x256xf32>
    %52 = tpu.matmul %51, %50, %cst_45 {dimension_numbers = #tpu.dot_dimension_numbers<[1], [0], [0], [1], [0, 0, 1, 1], [], []>} : vector<8x72xf32>, vector<72x256xf32>, vector<8x256xf32> -> vector<8x256xf32>
    %c0_46 = arith.constant 0 : index
    %c0_47 = arith.constant 0 : index
    %53 = vector.load %arg10[%c0_46, %c0_47] : memref<8x1xf32, #tpu.memory_space<vmem>>, vector<8x1xf32>
    %54 = vector.broadcast %53 : vector<8x1xf32> to vector<8x256xf32>
    %55 = arith.addf %52, %54 : vector<8x256xf32>
    %c0_48 = arith.constant 0 : index
    %c0_49 = arith.constant 0 : index
    %56 = vector.load %arg11[%c0_48, %c0_49] : memref<2x8xf32, #tpu.memory_space<vmem>>, vector<2x8xf32>
    %cst_50 = arith.constant dense<0.000000e+00> : vector<2x256xf32>
    %57 = tpu.matmul %56, %55, %cst_50 {dimension_numbers = #tpu.dot_dimension_numbers<[1], [0], [0], [1], [0, 0, 1, 1], [], []>} : vector<2x8xf32>, vector<8x256xf32>, vector<2x256xf32> -> vector<2x256xf32>
    %c0_51 = arith.constant 0 : index
    %c0_52 = arith.constant 0 : index
    %58 = vector.load %arg12[%c0_51, %c0_52] : memref<2x1xf32, #tpu.memory_space<vmem>>, vector<2x1xf32>
    %59 = vector.broadcast %58 : vector<2x1xf32> to vector<2x256xf32>
    %60 = arith.addf %57, %59 : vector<2x256xf32>
    %c0_53 = arith.constant 0 : index
    %c0_54 = arith.constant 0 : index
    %c0_55 = arith.constant 0 : index
    %61 = vector.load %arg13[%c0_53, %c0_54, %c0_55] : memref<1x2x256xf32, #tpu.memory_space<vmem>>, vector<1x2x256xf32>
    %62 = vector.shape_cast %61 : vector<1x2x256xf32> to vector<2x256xf32>
    %63 = vector.shape_cast %60 : vector<2x256xf32> to vector<1x2x256xf32>
    tpu.vector_store %arg13[%c0_53, %c0_54, %c0_55], %63 {strides = array<i32>} : memref<1x2x256xf32, #tpu.memory_space<vmem>>, vector<1x2x256xf32>,
    return
  }
  func.func @transform_0(%arg0: i32) -> (i32, i32, i32) {
    %c0_i32 = arith.constant 0 : i32
    %c0_i32_0 = arith.constant 0 : i32
    %c0_i32_1 = arith.constant 0 : i32
    return %arg0, %c0_i32, %c0_i32_0 : i32, i32, i32
  }
  func.func @transform_1(%arg0: i32) -> (i32, i32, i32) {
    %c0_i32 = arith.constant 0 : i32
    %c0_i32_0 = arith.constant 0 : i32
    %c0_i32_1 = arith.constant 0 : i32
    return %arg0, %c0_i32, %c0_i32_0 : i32, i32, i32
  }
  func.func @transform_2(%arg0: i32) -> (i32, i32) {
    %c0_i32 = arith.constant 0 : i32
    %c0_i32_0 = arith.constant 0 : i32
    %c0_i32_1 = arith.constant 0 : i32
    return %c0_i32, %c0_i32_0 : i32, i32
  }
  func.func @transform_3(%arg0: i32) -> (i32, i32) {
    %c0_i32 = arith.constant 0 : i32
    %c0_i32_0 = arith.constant 0 : i32
    %c0_i32_1 = arith.constant 0 : i32
    return %c0_i32, %c0_i32_0 : i32, i32
  }
  func.func @transform_4(%arg0: i32) -> (i32, i32) {
    %c0_i32 = arith.constant 0 : i32
    %c0_i32_0 = arith.constant 0 : i32
    %c0_i32_1 = arith.constant 0 : i32
    return %c0_i32, %c0_i32_0 : i32, i32
  }
  func.func @transform_5(%arg0: i32) -> (i32, i32) {
    %c0_i32 = arith.constant 0 : i32
    %c0_i32_0 = arith.constant 0 : i32
    %c0_i32_1 = arith.constant 0 : i32
    return %c0_i32, %c0_i32_0 : i32, i32
  }
  func.func @transform_6(%arg0: i32) -> (i32, i32) {
    %c0_i32 = arith.constant 0 : i32
    %c0_i32_0 = arith.constant 0 : i32
    %c0_i32_1 = arith.constant 0 : i32
    return %c0_i32, %c0_i32_0 : i32, i32
  }
  func.func @transform_7(%arg0: i32) -> (i32, i32) {
    %c0_i32 = arith.constant 0 : i32
    %c0_i32_0 = arith.constant 0 : i32
    %c0_i32_1 = arith.constant 0 : i32
    return %c0_i32, %c0_i32_0 : i32, i32
  }
  func.func @transform_8(%arg0: i32) -> (i32, i32) {
    %c0_i32 = arith.constant 0 : i32
    %c0_i32_0 = arith.constant 0 : i32
    %c0_i32_1 = arith.constant 0 : i32
    return %c0_i32, %c0_i32_0 : i32, i32
  }
  func.func @transform_9(%arg0: i32) -> (i32, i32) {
    %c0_i32 = arith.constant 0 : i32
    %c0_i32_0 = arith.constant 0 : i32
    %c0_i32_1 = arith.constant 0 : i32
    return %c0_i32, %c0_i32_0 : i32, i32
  }
  func.func @transform_10(%arg0: i32) -> (i32, i32) {
    %c0_i32 = arith.constant 0 : i32
    %c0_i32_0 = arith.constant 0 : i32
    %c0_i32_1 = arith.constant 0 : i32
    return %c0_i32, %c0_i32_0 : i32, i32
  }
  func.func @transform_11(%arg0: i32) -> (i32, i32) {
    %c0_i32 = arith.constant 0 : i32
    %c0_i32_0 = arith.constant 0 : i32
    %c0_i32_1 = arith.constant 0 : i32
    return %c0_i32, %c0_i32_0 : i32, i32
  }
  func.func @transform_12(%arg0: i32) -> (i32, i32, i32) {
    %c0_i32 = arith.constant 0 : i32
    %c0_i32_0 = arith.constant 0 : i32
    %c0_i32_1 = arith.constant 0 : i32
    return %arg0, %c0_i32, %c0_i32_0 : i32, i32, i32
  }
}

</mosaic_0001>

<bundles_post_ra>
// kernel: d_block_forward.1
= control target key start
LH: loop header
LB: loop body
LE: loop exit
PB: predicated region body
PF: predicated region fallthrough
CT: control target
= control target key end

     0   :  { %s3228_s21 = smov 0   ;;  %s5238_s0 = inlined_call_operand.vmem [shape: f32[2,4,64], index: 0, kind: input, shape index: {}]   ;;  %s5239_s1 = inlined_call_operand.vmem [shape: f32[2,2,256], index: 1, kind: input, shape index: {}]   ;;  %s5240_s2 = inlined_call_operand.vmem [shape: f32[8,4], index: 2, kind: input, shape index: {}]   ;;  %s5241_s3 = inlined_call_operand.vmem [shape: f32[8,1], index: 3, kind: input, shape index: {}]   ;;  %s5242_s4 = inlined_call_operand.vmem [shape: f32[256,256], index: 4, kind: input, shape index: {}]   ;;  %s5243_s5 = inlined_call_operand.vmem [shape: f32[2304,256], index: 5, kind: input, shape index: {}]   ;;  %s5244_s6 = inlined_call_operand.vmem [shape: f32[8,2], index: 6, kind: input, shape index: {}]   ;;  %s5245_s7 = inlined_call_operand.vmem [shape: f32[8,1], index: 7, kind: input, shape index: {}]   ;;  %s5246_s8 = inlined_call_operand.vmem [shape: f32[8,72], index: 8, kind: input, shape index: {}]   ;;  %s5247_s9 = inlined_call_operand.vmem [shape: f32[8,1], index: 9, kind: input, shape index: {}]   ;;  %s5248_s10 = inlined_call_operand.vmem [shape: f32[2,8], index: 10, kind: input, shape index: {}]   ;;  %s5249_s11 = inlined_call_operand.vmem [shape: f32[2,1], index: 11, kind: input, shape index: {}]   ;;  %s5250_s12 = inlined_call_operand.vmem [shape: f32[2,2,256], index: 12, kind: output, shape index: {}]  }
   0x1 LB: > { %s2443_s22 = sadd.s32 4294967295, %s3158_s21   ;;  %p2447_p0 = scmp.ge.s32.totalorder %s3158_s21, 1  ;;  %s3158_s21 = sphi %s3228_s21, %s22_s21  }
   0x2   : > { %p371_p1 = scmp.lt.s32.totalorder %s3158_s21, 3 }
   0x4   : > { %p372_p2 = pnand %p2447_p0, %p371_p1 }
   0x5   : > { %p417_p3 = scmp.lt.s32.totalorder (!%p372_p2), %s2443_s22, 1  ;;  %v3160_v0 = vmov (!%p372_p2), 0.0   ;;  %vm3161_vm0 = vmmov (!%p372_p2), 0   ;;  %v433_v1 = vld [vmem:[%s5241_s3] sm:$0xff] (!%p372_p2)  ;;  %v534_v2 = vld [vmem:[%s5242_s4 + $0x88] sm:$0xff] (!%p372_p2)  ;;  %v3162_v3 = vmov (!%p372_p2), 0  }
   0x6   : > { %375 = sbr.rel (%p372_p2) target bundleno = 1621 (0x655), region = 68  ;;  %2472 = vmatprep.subr.mxu0 (!%p372_p2), %v3160_v0  ;;  %2474 = vmatprep.mubr.msk.f32.mxu0 (!%p372_p2), %vm3161_vm0, %v3160_v0  ;;  %v897_v4 = vld [vmem:[%s5245_s7] sm:$0xff] (!%p372_p2)  ;;  %v536_v5 = vld [vmem:[%s5242_s4 + $0x98] sm:$0xff] (!%p372_p2)  ;;  %v535_v7 = vld [vmem:[%s5242_s4 + $0x90] sm:$0xff] (!%p372_p2)  ;;  %vm443_vm1 = vcmask (!%p372_p2), 1043456   ;;  %vm439_vm2 = vcmask (!%p372_p2), 31744  }
   0x7   : > { %3150 = vset.pattern.permute.xlu0 (!%p372_p2), %v3162_v3  ;;  %v533_v6 = vld [vmem:[%s5242_s4 + $0x80] sm:$0xff] (!%p372_p2)  ;;  %618 = vmatprep.mubr.f32.mxu1 (!%p372_p2), %v3160_v0  ;;  %v2477_v8 = vpack.c.bf16 (!%p372_p2), %v536_v5, %v534_v2  ;;  %v538_v10 = vld [vmem:[%s5242_s4 + $0xa8] sm:$0xff] (!%p372_p2)  ;;  %v540_v11 = vld [vmem:[%s5242_s4 + $0xb8] sm:$0xff] (!%p372_p2)  ;;  %vm551_vm3 = vcmask (!%p372_p2), 523264   ;;  %vm907_vm4 = vcmask (!%p372_p2), 1041408   ;;  %vm903_vm5 = vcmask (!%p372_p2), 15360  }
   0x8   : > { %436 = vperm.xlu0 (!%p372_p2), %3150, %v433_v1   ;;  %v2479_v9 = vpack.c.bf16 (!%p372_p2), %v535_v7, %v533_v6  ;;  %v537_v12 = vld [vmem:[%s5242_s4 + $0xa0] sm:$0xff] (!%p372_p2)  ;;  %3151 = vset.pattern.permute.xlu1 (!%p372_p2), %v3162_v3  ;;  %v2481_v13 = vpack.c.bf16 (!%p372_p2), %v540_v11, %v538_v10  ;;  %v539_v14 = vld [vmem:[%s5242_s4 + $0xb0] sm:$0xff] (!%p372_p2)  ;;  %v542_v15 = vld [vmem:[%s5242_s4 + $0xc8] sm:$0xff] (!%p372_p2)  ;;  %vm2207_vm6 = vcmask (!%p372_p2), 588800   ;;  %vm2289_vm7 = vcmask (!%p372_p2), 64512  }
   0x9   : > { %v544_v16 = vld [vmem:[%s5242_s4 + $0xd8] sm:$0xff] (!%p372_p2)  ;;  %v431_v17 = vld [vmem:[%s5240_s2] sm:$0xff] (!%p372_p2)  ;;  %2478 = vmatprep.subr.bf16.mxu1 (!%p372_p2), %v2477_v8  ;;  %v2483_v19 = vpack.c.bf16 (!%p372_p2), %v539_v14, %v537_v12  ;;  %v543_v22 = vld [vmem:[%s5242_s4 + $0xd0] sm:$0xff] (!%p372_p2) }
   0xa   : > { %2480 = vmatpush1.bf16.msra.mxu1 (!%p372_p2), %v2479_v9  ;;  %v2485_v20 = vpack.c.bf16 (!%p372_p2), %v544_v16, %v542_v15  ;;  %v541_v21 = vld [vmem:[%s5242_s4 + $0xc0] sm:$0xff] (!%p372_p2)  ;;  %v546_v23 = vld [vmem:[%s5242_s4 + $0xe8] sm:$0xff] (!%p372_p2)  ;;  %v548_v24 = vld [vmem:[%s5242_s4 + $0xf8] sm:$0xff] (!%p372_p2) }
   0xb   : > { %2482 = vmatprep.subr.bf16.mxu1 (!%p372_p2), %v2481_v13  ;;  %v2487_v25 = vpack.c.bf16 (!%p372_p2), %v543_v22, %v541_v21  ;;  %v2489_v26 = vpack.c.bf16 (!%p372_p2), %v548_v24, %v546_v23  ;;  %v545_v27 = vld [vmem:[%s5242_s4 + $0xe0] sm:$0xff] (!%p372_p2)  ;;  %v547_v28 = vld [vmem:[%s5242_s4 + $0xf0] sm:$0xff] (!%p372_p2)  ;;  %v518_v30 = vld [vmem:[%s5242_s4 + $0x8] sm:$0xff] (!%p372_p2) }
   0xc   : > { %900 = vperm.xlu0 (!%p372_p2), %3150, %v897_v4   ;;  %v2491_v29 = vpack.c.bf16 (!%p372_p2), %v547_v28, %v545_v27  ;;  %v520_v31 = vld [vmem:[%s5242_s4 + $0x18] sm:$0xff] (!%p372_p2)  ;;  %v517_v33 = vld [vmem:[%s5242_s4] sm:$0xff] (!%p372_p2)  ;;  %v519_v34 = vld [vmem:[%s5242_s4 + $0x10] sm:$0xff] (!%p372_p2) }
   0xd   : > { %s5252_s22 = smov (!%p417_p3, %s2443_s22), 1  ;;  %v2493_v32 = vpack.c.bf16 %v520_v31, %v518_v30  ;;  %v522_v37 = vld [vmem:[%s5242_s4 + $0x28] sm:$0xff]  ;;  %v524_v38 = vld [vmem:[%s5242_s4 + $0x38] sm:$0xff]  ;;  %v2495_v41 = vpack.c.bf16 %v519_v34, %v517_v33  ;;  %v521_v44 = vld [vmem:[%s5242_s4 + $0x20] sm:$0xff] }
   0xe   : > { %s3266_s25 = sshll.u32 %s5252_s22, 2  ;;  %2484 = vmatpush1.bf16.msra.mxu1 %v2483_v19  ;;  %v2497_v43 = vpack.c.bf16 %v524_v38, %v522_v37  ;;  %v523_v45 = vld [vmem:[%s5242_s4 + $0x30] sm:$0xff]  ;;  %v526_v46 = vld [vmem:[%s5242_s4 + $0x48] sm:$0xff]  ;;  %v528_v47 = vld [vmem:[%s5242_s4 + $0x58] sm:$0xff] }
   0xf   : > { %s420_s22 = scalar_lea.vmem %s5238_s0, %s3266_s25  ;;  %2486 = vmatprep.subr.bf16.mxu1 %v2485_v20  ;;  %v2499_v48 = vpack.c.bf16 %v523_v45, %v521_v44  ;;  %v2501_v49 = vpack.c.bf16 %v528_v47, %v526_v46  ;;  %v525_v50 = vld [vmem:[%s5242_s4 + $0x40] sm:$0xff]  ;;  %v527_v51 = vld [vmem:[%s5242_s4 + $0x50] sm:$0xff]  ;;  %v530_v52 = vld [vmem:[%s5242_s4 + $0x68] sm:$0xff]  ;;  %s425_s27 = scalar_lea.vmem %s5239_s1, %s3266_s25 }
  0x10   : > { %v432_v18 = vld [vmem:[%s420_s22] sm:$0xf]  ;;  %v532_v53 = vld [vmem:[%s5242_s4 + $0x78] sm:$0xff]  ;;  %v2503_v54 = vpack.c.bf16 %v527_v51, %v525_v50  ;;  %v531_v57 = vld [vmem:[%s5242_s4 + $0x70] sm:$0xff]  ;;  %s430_s14 = scalar_lea.vmem %s5250_s12, %s3266_s25 }
  0x11   : > { %2473 = vmatpush3.msk.msra.mxu0 %vm443_vm1, %v432_v18  ;;  %v2505_v55 = vpack.c.bf16 %v532_v53, %v530_v52  ;;  %v529_v56 = vld [vmem:[%s5242_s4 + $0x60] sm:$0xff]  ;;  %v699_v58 = vld [vmem:[%s5242_s4 + $0x108] sm:$0xff]  ;;  %v701_v59 = vld [vmem:[%s5242_s4 + $0x118] sm:$0xff] }
  0x12   : > { %2475 = vmatmul.mubr.msk.f32.vlgmr.msra.gmra.mrb[0].mxu0 %vm439_vm2, %v431_v17  ;;  %2488 = vmatpush1.bf16.msra.mxu1 %v2487_v25  ;;  %v2507_v60 = vpack.c.bf16 %v531_v57, %v529_v56  ;;  %v2509_v61 = vpack.c.bf16 %v701_v59, %v699_v58  ;;  %v698_v62 = vld [vmem:[%s5242_s4 + $0x100] sm:$0xff]  ;;  %v700_v63 = vld [vmem:[%s5242_s4 + $0x110] sm:$0xff]  ;;  %v703_v1 = vld [vmem:[%s5242_s4 + $0x128] sm:$0xff] }
  0x13   : > { %978 = vmatprep.mubr.f32.mxu0 %v3160_v0  ;;  %2490 = vmatprep.subr.bf16.mxu1 %v2489_v26  ;;  %v705_v2 = vld [vmem:[%s5242_s4 + $0x138] sm:$0xff]  ;;  %v2511_v3 = vpack.c.bf16 %v700_v63, %v698_v62  ;;  %v702_v5 = vld [vmem:[%s5242_s4 + $0x120] sm:$0xff]  ;;  %v704_v6 = vld [vmem:[%s5242_s4 + $0x130] sm:$0xff] }
  0x14   : > { %v2513_v4 = vpack.c.bf16 %v705_v2, %v703_v1  ;;  %v707_v7 = vld [vmem:[%s5242_s4 + $0x148] sm:$0xff]  ;;  %v709_v8 = vld [vmem:[%s5242_s4 + $0x158] sm:$0xff]  ;;  %v2515_v9 = vpack.c.bf16 %v704_v6, %v702_v5  ;;  %v706_v11 = vld [vmem:[%s5242_s4 + $0x140] sm:$0xff] }
  0x15   : > { %v2517_v10 = vpack.c.bf16 %v709_v8, %v707_v7  ;;  %v708_v12 = vld [vmem:[%s5242_s4 + $0x150] sm:$0xff]  ;;  %v711_v13 = vld [vmem:[%s5242_s4 + $0x168] sm:$0xff]  ;;  %v713_v14 = vld [vmem:[%s5242_s4 + $0x178] sm:$0xff] }
  0x16   : > { %2492 = vmatpush1.bf16.msra.mxu1 %v2491_v29  ;;  %v2519_v15 = vpack.c.bf16 %v708_v12, %v706_v11  ;;  %v2521_v16 = vpack.c.bf16 %v713_v14, %v711_v13  ;;  %v710_v17 = vld [vmem:[%s5242_s4 + $0x160] sm:$0xff]  ;;  %v712_v18 = vld [vmem:[%s5242_s4 + $0x170] sm:$0xff]  ;;  %v791_v19 = vld [vmem:[%s5242_s4 + $0x188] sm:$0xff] }
  0x17   : > { %2494 = vmatprep.subr.bf16.mxu1 %v2493_v32  ;;  %v793_v20 = vld [vmem:[%s5242_s4 + $0x198] sm:$0xff]  ;;  %v2523_v21 = vpack.c.bf16 %v712_v18, %v710_v17  ;;  %v790_v23 = vld [vmem:[%s5242_s4 + $0x180] sm:$0xff]  ;;  %v792_v24 = vld [vmem:[%s5242_s4 + $0x190] sm:$0xff] }
  0x18   : > { %v2525_v22 = vpack.c.bf16 %v793_v20, %v791_v19  ;;  %v795_v25 = vld [vmem:[%s5242_s4 + $0x1a8] sm:$0xff]  ;;  %v797_v26 = vld [vmem:[%s5242_s4 + $0x1b8] sm:$0xff]  ;;  %v2527_v27 = vpack.c.bf16 %v792_v24, %v790_v23  ;;  %v794_v30 = vld [vmem:[%s5242_s4 + $0x1a0] sm:$0xff] }
  0x19   : > { %v2529_v29 = vpack.c.bf16 %v797_v26, %v795_v25  ;;  %v796_v31 = vld [vmem:[%s5242_s4 + $0x1b0] sm:$0xff]  ;;  %v799_v32 = vld [vmem:[%s5242_s4 + $0x1c8] sm:$0xff]  ;;  %v801_v33 = vld [vmem:[%s5242_s4 + $0x1d8] sm:$0xff] }
  0x1a   : > { %v2531_v34 = vpack.c.bf16 %v796_v31, %v794_v30  ;;  %v800_v37 = vld [vmem:[%s5242_s4 + $0x1d0] sm:$0xff]  ;;  %v803_v38 = vld [vmem:[%s5242_s4 + $0x1e8] sm:$0xff]  ;;  %v1120_v50 = vld [vmem:[%s5243_s5 + $0x200] sm:$0xff] }
  0x1b   : > { %v804_v44 = vld [vmem:[%s5242_s4 + $0x1f0] sm:$0xff]  ;;  %v1121_v47 = vld [vmem:[%s5243_s5 + $0x208] sm:$0xff]  ;;  %v1127_v53 = vld [vmem:[%s5243_s5 + $0x238] sm:$0xff] }
  0x1c   : > { %v1122_v51 = vld [vmem:[%s5243_s5 + $0x210] sm:$0xff]  ;;  %v1125_v52 = vld [vmem:[%s5243_s5 + $0x228] sm:$0xff]  ;;  %v1131_v59 = vld [vmem:[%s5243_s5 + $0x258] sm:$0xff] }
  0x1d   : > { %v1126_v56 = vld [vmem:[%s5243_s5 + $0x230] sm:$0xff]  ;;  %v1129_v58 = vld [vmem:[%s5243_s5 + $0x248] sm:$0xff]  ;;  %v1135_v2 = vld [vmem:[%s5243_s5 + $0x278] sm:$0xff] }
  0x1e   : > { %v1130_v62 = vld [vmem:[%s5243_s5 + $0x250] sm:$0xff]  ;;  %v1133_v1 = vld [vmem:[%s5243_s5 + $0x268] sm:$0xff]  ;;  %v1139_v8 = vld [vmem:[%s5243_s5 + $0x298] sm:$0xff] }
  0x1f   : > { %v1134_v5 = vld [vmem:[%s5243_s5 + $0x270] sm:$0xff]  ;;  %v1137_v7 = vld [vmem:[%s5243_s5 + $0x288] sm:$0xff]  ;;  %v1143_v14 = vld [vmem:[%s5243_s5 + $0x2b8] sm:$0xff] }
  0x20   : > { %v1138_v11 = vld [vmem:[%s5243_s5 + $0x290] sm:$0xff]  ;;  %v1141_v13 = vld [vmem:[%s5243_s5 + $0x2a8] sm:$0xff]  ;;  %v1147_v20 = vld [vmem:[%s5243_s5 + $0x2d8] sm:$0xff] }
  0x21   : > { %v1142_v17 = vld [vmem:[%s5243_s5 + $0x2b0] sm:$0xff]  ;;  %v1145_v19 = vld [vmem:[%s5243_s5 + $0x2c8] sm:$0xff]  ;;  %v1151_v26 = vld [vmem:[%s5243_s5 + $0x2f8] sm:$0xff] }
  0x22   : > { %v1146_v23 = vld [vmem:[%s5243_s5 + $0x2d0] sm:$0xff]  ;;  %v1149_v25 = vld [vmem:[%s5243_s5 + $0x2e8] sm:$0xff] }
  0x23   : > { %v1153_v31 = vld [vmem:[%s5243_s5 + $0x308] sm:$0xff] }
  0x87   : > { %v437_v35 = vpop.permute.xlu0 %436 }
  0xe5   : > { %v513_v36 = vpop.f32.mrb[0].mxu0 }
  0xe6   : > { %v3321_v39 = vadd.f32 %v513_v36, %v437_v35  ;;  %v2476_v40 = vpop.f32.mrb[1].mxu0  ;;  %v2533_v35 = vpack.c.bf16 %v801_v33, %v799_v32  ;;  %v798_v36 = vld [vmem:[%s5242_s4 + $0x1c0] sm:$0xff]  ;;  %v1155_v32 = vld [vmem:[%s5243_s5 + $0x318] sm:$0xff] }
  0xe7   : > { %v805_v40 = vld [vmem:[%s5242_s4 + $0x1f8] sm:$0xff]  ;;  %v2637_v33 = vpack.c.bf16 %v1155_v32, %v1153_v31  ;;  %v993_v32 = vld [vmem:[%s5243_s5 + $0x40] sm:$0xff] }
  0xe8   : > { %v550_v42 = vrot.slane %v3321_v39, 2  ;;  %v714_v28 = vrot.slane %v3321_v39, 4  ;;  %v806_v46 = vrot.slane %v3321_v39, 6 }
  0xea   : > { %2455 = vmatmul.mubr.msk.f32.vlgmr.msra.gmra.mrb[0].mxu1 %vm551_vm3, %v550_v42  ;;  %v2537_v42 = vpack.c.bf16 %v805_v40, %v803_v38  ;;  %v1159_v38 = vld [vmem:[%s5243_s5 + $0x338] sm:$0xff] }
  0xeb   : > { %2496 = vmatpush1.bf16.msra.mxu1 %v2495_v41  ;;  %691 = vmatprep.mubr.f32.mxu1 %v3160_v0  ;;  %v2535_v41 = vpack.c.bf16 %v800_v37, %v798_v36  ;;  %v1157_v37 = vld [vmem:[%s5243_s5 + $0x328] sm:$0xff] }
  0xec   : > { %2498 = vmatprep.subr.bf16.mxu1 %v2497_v43  ;;  %v802_v43 = vld [vmem:[%s5242_s4 + $0x1e0] sm:$0xff]  ;;  %v2641_v40 = vpack.c.bf16 %v1159_v38, %v1157_v37 }
  0xed   : > { %v2539_v45 = vpack.c.bf16 %v804_v44, %v802_v43  ;;  %v1161_v44 = vld [vmem:[%s5243_s5 + $0x348] sm:$0xff]  ;;  %v997_v38 = vld [vmem:[%s5243_s5 + $0x60] sm:$0xff] }
  0xef   : > { %2500 = vmatpush1.bf16.msra.mxu1 %v2499_v48  ;;  %v1123_v48 = vld [vmem:[%s5243_s5 + $0x218] sm:$0xff] }
  0xf0   : > { %2502 = vmatprep.subr.bf16.mxu1 %v2501_v49  ;;  %v2605_v49 = vpack.c.bf16 %v1123_v48, %v1121_v47  ;;  %v1160_v47 = vld [vmem:[%s5243_s5 + $0x340] sm:$0xff]  ;;  %v1162_v48 = vld [vmem:[%s5243_s5 + $0x350] sm:$0xff] }
  0xf3   : > { %2504 = vmatpush1.bf16.msra.mxu1 %v2503_v54  ;;  %v2609_v54 = vpack.c.bf16 %v1127_v53, %v1125_v52  ;;  %v1164_v52 = vld [vmem:[%s5243_s5 + $0x360] sm:$0xff]  ;;  %v1166_v53 = vld [vmem:[%s5243_s5 + $0x370] sm:$0xff] }
  0xf4   : > { %2506 = vmatprep.subr.bf16.mxu1 %v2505_v55  ;;  %v1124_v55 = vld [vmem:[%s5243_s5 + $0x220] sm:$0xff] }
  0xf5   : > { %v2611_v57 = vpack.c.bf16 %v1126_v56, %v1124_v55  ;;  %v1169_v55 = vld [vmem:[%s5243_s5 + $0x388] sm:$0xff]  ;;  %v1171_v56 = vld [vmem:[%s5243_s5 + $0x398] sm:$0xff] }
  0xf7   : > { %2508 = vmatpush1.bf16.msra.mxu1 %v2507_v60  ;;  %v2613_v60 = vpack.c.bf16 %v1131_v59, %v1129_v58  ;;  %v1168_v58 = vld [vmem:[%s5243_s5 + $0x380] sm:$0xff]  ;;  %v1170_v59 = vld [vmem:[%s5243_s5 + $0x390] sm:$0xff] }
  0xf8   : > { %2510 = vmatprep.subr.bf16.mxu1 %v2509_v61  ;;  %v1128_v61 = vld [vmem:[%s5243_s5 + $0x240] sm:$0xff] }
  0xf9   : > { %v2615_v63 = vpack.c.bf16 %v1130_v62, %v1128_v61  ;;  %v1173_v61 = vld [vmem:[%s5243_s5 + $0x3a8] sm:$0xff]  ;;  %v1175_v62 = vld [vmem:[%s5243_s5 + $0x3b8] sm:$0xff] }
  0xfa   : > { %2456 = vmatmul.mubr.msk.f32.vlgmr.msra.gmra.mrb[0].mxu1 %vm551_vm3, %v3321_v39  ;;  %v2607_v39 = vpack.c.bf16 %v1122_v51, %v1120_v50  ;;  %v1165_v50 = vld [vmem:[%s5243_s5 + $0x368] sm:$0xff]  ;;  %v1167_v51 = vld [vmem:[%s5243_s5 + $0x378] sm:$0xff] }
  0xfb   : > { %2512 = vmatpush1.bf16.msra.mxu1 %v2511_v3  ;;  %781 = vmatprep.mubr.f32.mxu1 %v3160_v0  ;;  %v2617_v3 = vpack.c.bf16 %v1135_v2, %v1133_v1  ;;  %v1172_v1 = vld [vmem:[%s5243_s5 + $0x3a0] sm:$0xff]  ;;  %v1174_v2 = vld [vmem:[%s5243_s5 + $0x3b0] sm:$0xff] }
  0xfc   : > { %2514 = vmatprep.subr.bf16.mxu1 %v2513_v4  ;;  %v1132_v4 = vld [vmem:[%s5243_s5 + $0x260] sm:$0xff] }
  0xfd   : > { %v2619_v6 = vpack.c.bf16 %v1134_v5, %v1132_v4  ;;  %v1177_v4 = vld [vmem:[%s5243_s5 + $0x3c8] sm:$0xff]  ;;  %v1179_v5 = vld [vmem:[%s5243_s5 + $0x3d8] sm:$0xff] }
  0xff   : > { %2516 = vmatpush1.bf16.msra.mxu1 %v2515_v9  ;;  %v2621_v9 = vpack.c.bf16 %v1139_v8, %v1137_v7  ;;  %v1176_v7 = vld [vmem:[%s5243_s5 + $0x3c0] sm:$0xff]  ;;  %v1178_v8 = vld [vmem:[%s5243_s5 + $0x3d0] sm:$0xff] }
 0x100   : > { %2518 = vmatprep.subr.bf16.mxu1 %v2517_v10  ;;  %v1136_v10 = vld [vmem:[%s5243_s5 + $0x280] sm:$0xff] }
 0x101   : > { %v2623_v12 = vpack.c.bf16 %v1138_v11, %v1136_v10  ;;  %v2459_v10 = vld.sshfl [vmem:[%s425_s27] sm:$0x33 pattern:$0x76325410] }
 0x102   : > { %v892_v11 = vcombine.high %v2459_v10, %v2459_v10 }
 0x103   : > { %2520 = vmatpush1.bf16.msra.mxu1 %v2519_v15  ;;  %v2625_v15 = vpack.c.bf16 %v1143_v14, %v1141_v13  ;;  %v988_v13 = vld [vmem:[%s5243_s5 + $0x18] sm:$0xff] }
 0x104   : > { %2522 = vmatprep.subr.bf16.mxu1 %v2521_v16  ;;  %v1140_v16 = vld [vmem:[%s5243_s5 + $0x2a0] sm:$0xff] }
 0x105   : > { %v2627_v18 = vpack.c.bf16 %v1142_v17, %v1140_v16  ;;  %v987_v16 = vld [vmem:[%s5243_s5 + $0x10] sm:$0xff] }
 0x107   : > { %2524 = vmatpush1.bf16.msra.mxu1 %v2523_v21  ;;  %v2629_v21 = vpack.c.bf16 %v1147_v20, %v1145_v19  ;;  %v992_v19 = vld [vmem:[%s5243_s5 + $0x38] sm:$0xff] }
 0x108   : > { %2526 = vmatprep.subr.bf16.mxu1 %v2525_v22  ;;  %v1144_v22 = vld [vmem:[%s5243_s5 + $0x2c0] sm:$0xff] }
 0x109   : > { %v2631_v24 = vpack.c.bf16 %v1146_v23, %v1144_v22  ;;  %v882_v23 = vld [vmem:[%s5244_s6] sm:$0xff] }
 0x10a   : > { %2457 = vmatmul.mubr.msk.f32.vlgmr.msra.gmra.mrb[0].mxu1 %vm551_vm3, %v714_v28  ;;  %v1148_v28 = vld [vmem:[%s5243_s5 + $0x2e0] sm:$0xff] }
 0x10b   : > { %2528 = vmatpush1.bf16.msra.mxu1 %v2527_v27  ;;  %873 = vmatprep.mubr.f32.mxu1 %v3160_v0  ;;  %v2633_v27 = vpack.c.bf16 %v1151_v26, %v1149_v25  ;;  %v989_v26 = vld [vmem:[%s5243_s5 + $0x20] sm:$0xff] }
 0x10c   : > { %2530 = vmatprep.subr.bf16.mxu1 %v2529_v29  ;;  %v1150_v29 = vld [vmem:[%s5243_s5 + $0x2f0] sm:$0xff] }
 0x10d   : > { %v2635_v30 = vpack.c.bf16 %v1150_v29, %v1148_v28  ;;  %v994_v28 = vld [vmem:[%s5243_s5 + $0x48] sm:$0xff]  ;;  %v996_v29 = vld [vmem:[%s5243_s5 + $0x58] sm:$0xff] }
 0x10e   : > { %v2549_v31 = vpack.c.bf16 %v996_v29, %v994_v28  ;;  %v1033_v29 = vld [vmem:[%s5243_s5 + $0x180] sm:$0xff] }
 0x10f   : > { %2532 = vmatpush1.bf16.msra.mxu1 %v2531_v34  ;;  %v1152_v34 = vld [vmem:[%s5243_s5 + $0x300] sm:$0xff] }
 0x110   : > { %2534 = vmatprep.subr.bf16.mxu1 %v2533_v35  ;;  %v1154_v35 = vld [vmem:[%s5243_s5 + $0x310] sm:$0xff] }
 0x111   : > { %v2639_v36 = vpack.c.bf16 %v1154_v35, %v1152_v34  ;;  %v998_v34 = vld [vmem:[%s5243_s5 + $0x68] sm:$0xff]  ;;  %v1000_v35 = vld [vmem:[%s5243_s5 + $0x78] sm:$0xff] }
 0x112   : > { %v2553_v37 = vpack.c.bf16 %v1000_v35, %v998_v34  ;;  %v1037_v35 = vld [vmem:[%s5243_s5 + $0x1a0] sm:$0xff] }
 0x113   : > { %2536 = vmatpush1.bf16.msra.mxu1 %v2535_v41  ;;  %v1156_v41 = vld [vmem:[%s5243_s5 + $0x320] sm:$0xff] }
 0x114   : > { %2538 = vmatprep.subr.bf16.mxu1 %v2537_v42  ;;  %v1158_v42 = vld [vmem:[%s5243_s5 + $0x330] sm:$0xff] }
 0x115   : > { %v2643_v43 = vpack.c.bf16 %v1158_v42, %v1156_v41  ;;  %v1002_v41 = vld [vmem:[%s5243_s5 + $0x88] sm:$0xff]  ;;  %v1004_v42 = vld [vmem:[%s5243_s5 + $0x98] sm:$0xff] }
 0x117   : > { %2540 = vmatpush1.bf16.msra.mxu1 %v2539_v45  ;;  %v1163_v45 = vld [vmem:[%s5243_s5 + $0x358] sm:$0xff] }
 0x118   : > { %2606 = vmatprep.subr.bf16.mxu1 %v2605_v49  ;;  %v2647_v49 = vpack.c.bf16 %v1162_v48, %v1160_v47  ;;  %v1006_v47 = vld [vmem:[%s5243_s5 + $0xa8] sm:$0xff]  ;;  %v1008_v48 = vld [vmem:[%s5243_s5 + $0xb8] sm:$0xff] }
 0x11a   : > { %2458 = vmatmul.mubr.msk.f32.vlgmr.msra.gmra.mrb[0].mxu1 %vm551_vm3, %v806_v46  ;;  %v2645_v46 = vpack.c.bf16 %v1163_v45, %v1161_v44  ;;  %v2557_v44 = vpack.c.bf16 %v1004_v42, %v1002_v41  ;;  %v1001_v45 = vld [vmem:[%s5243_s5 + $0x80] sm:$0xff] }
 0x11b   : > { %2608 = vmatpush1.bf16.msra.mxu1 %v2607_v39  ;;  %v2649_v39 = vpack.c.bf16 %v1167_v51, %v1165_v50  ;;  %v2561_v50 = vpack.c.bf16 %v1008_v48, %v1006_v47  ;;  %v1005_v51 = vld [vmem:[%s5243_s5 + $0xa0] sm:$0xff]  ;;  %v1181_v47 = vld [vmem:[%s5243_s5 + $0x3e8] sm:$0xff] }
 0x11c   : > { %2610 = vmatprep.subr.bf16.mxu1 %v2609_v54  ;;  %v2651_v54 = vpack.c.bf16 %v1166_v53, %v1164_v52  ;;  %v1010_v52 = vld [vmem:[%s5243_s5 + $0xc8] sm:$0xff]  ;;  %v1012_v53 = vld [vmem:[%s5243_s5 + $0xd8] sm:$0xff]  ;;  %v1041_v42 = vld [vmem:[%s5243_s5 + $0x1c0] sm:$0xff] }
 0x11f   : > { %2612 = vmatpush1.bf16.msra.mxu1 %v2611_v57  ;;  %v2653_v57 = vpack.c.bf16 %v1171_v56, %v1169_v55  ;;  %v2565_v55 = vpack.c.bf16 %v1012_v53, %v1010_v52  ;;  %v1009_v56 = vld [vmem:[%s5243_s5 + $0xc0] sm:$0xff] }
 0x120   : > { %2614 = vmatprep.subr.bf16.mxu1 %v2613_v60  ;;  %v2655_v60 = vpack.c.bf16 %v1170_v59, %v1168_v58  ;;  %v1014_v58 = vld [vmem:[%s5243_s5 + $0xe8] sm:$0xff]  ;;  %v1016_v59 = vld [vmem:[%s5243_s5 + $0xf8] sm:$0xff]  ;;  %v1180_v53 = vld [vmem:[%s5243_s5 + $0x3e0] sm:$0xff] }
 0x123   : > { %2616 = vmatpush1.bf16.msra.mxu1 %v2615_v63  ;;  %v2657_v63 = vpack.c.bf16 %v1175_v62, %v1173_v61  ;;  %v2569_v61 = vpack.c.bf16 %v1016_v59, %v1014_v58  ;;  %v1013_v62 = vld [vmem:[%s5243_s5 + $0xe0] sm:$0xff]  ;;  %v1391_v58 = vld [vmem:[%s5243_s5 + $0x608] sm:$0xff] }
 0x124   : > { %2618 = vmatprep.subr.bf16.mxu1 %v2617_v3  ;;  %v2659_v3 = vpack.c.bf16 %v1174_v2, %v1172_v1  ;;  %v1018_v1 = vld [vmem:[%s5243_s5 + $0x108] sm:$0xff]  ;;  %v1020_v2 = vld [vmem:[%s5243_s5 + $0x118] sm:$0xff] }
 0x127   : > { %2620 = vmatpush1.bf16.msra.mxu1 %v2619_v6  ;;  %v2661_v6 = vpack.c.bf16 %v1179_v5, %v1177_v4  ;;  %v2573_v4 = vpack.c.bf16 %v1020_v2, %v1018_v1  ;;  %v1017_v5 = vld [vmem:[%s5243_s5 + $0x100] sm:$0xff]  ;;  %v1392_v2 = vld [vmem:[%s5243_s5 + $0x610] sm:$0xff] }
 0x128   : > { %2622 = vmatprep.subr.bf16.mxu1 %v2621_v9  ;;  %v2663_v9 = vpack.c.bf16 %v1178_v8, %v1176_v7  ;;  %v1022_v7 = vld [vmem:[%s5243_s5 + $0x128] sm:$0xff]  ;;  %v1024_v8 = vld [vmem:[%s5243_s5 + $0x138] sm:$0xff]  ;;  %v1390_v1 = vld [vmem:[%s5243_s5 + $0x600] sm:$0xff] }
 0x12b   : > { %2624 = vmatpush1.bf16.msra.mxu1 %v2623_v12  ;;  %v986_v12 = vld [vmem:[%s5243_s5 + $0x8] sm:$0xff] }
 0x12c   : > { %2626 = vmatprep.subr.bf16.mxu1 %v2625_v15  ;;  %v985_v15 = vld [vmem:[%s5243_s5] sm:$0xff] }
 0x12f   : > { %2628 = vmatpush1.bf16.msra.mxu1 %v2627_v18  ;;  %v990_v18 = vld [vmem:[%s5243_s5 + $0x28] sm:$0xff] }
 0x130   : > { %2630 = vmatprep.subr.bf16.mxu1 %v2629_v21  ;;  %v2541_v21 = vpack.c.bf16 %v988_v13, %v986_v12  ;;  %v2545_v25 = vpack.c.bf16 %v992_v19, %v990_v18  ;;  %v1023_v12 = vld [vmem:[%s5243_s5 + $0x130] sm:$0xff]  ;;  %v1026_v13 = vld [vmem:[%s5243_s5 + $0x148] sm:$0xff] }
 0x131   : > { %v1027_v18 = vld [vmem:[%s5243_s5 + $0x150] sm:$0xff]  ;;  %v1030_v19 = vld [vmem:[%s5243_s5 + $0x168] sm:$0xff] }
 0x133   : > { %2632 = vmatpush1.bf16.msra.mxu1 %v2631_v24  ;;  %v2543_v24 = vpack.c.bf16 %v987_v16, %v985_v15 }
 0x134   : > { %2634 = vmatprep.subr.bf16.mxu1 %v2633_v27  ;;  %v991_v27 = vld [vmem:[%s5243_s5 + $0x30] sm:$0xff] }
 0x137   : > { %2636 = vmatpush1.bf16.msra.mxu1 %v2635_v30  ;;  %v2547_v30 = vpack.c.bf16 %v991_v27, %v989_v26  ;;  %v1036_v26 = vld [vmem:[%s5243_s5 + $0x198] sm:$0xff] }
 0x138   : > { %2638 = vmatprep.subr.bf16.mxu1 %v2637_v33  ;;  %v995_v33 = vld [vmem:[%s5243_s5 + $0x50] sm:$0xff] }
 0x13b   : > { %2640 = vmatpush1.bf16.msra.mxu1 %v2639_v36  ;;  %v2551_v36 = vpack.c.bf16 %v995_v33, %v993_v32  ;;  %v1040_v32 = vld [vmem:[%s5243_s5 + $0x1b8] sm:$0xff] }
 0x13c   : > { %2642 = vmatprep.subr.bf16.mxu1 %v2641_v40  ;;  %v999_v40 = vld [vmem:[%s5243_s5 + $0x70] sm:$0xff] }
 0x13f   : > { %2644 = vmatpush1.bf16.msra.mxu1 %v2643_v43  ;;  %v2555_v43 = vpack.c.bf16 %v999_v40, %v997_v38  ;;  %v1044_v38 = vld [vmem:[%s5243_s5 + $0x1d8] sm:$0xff] }
 0x140   : > { %2646 = vmatprep.subr.bf16.mxu1 %v2645_v46  ;;  %v1003_v46 = vld [vmem:[%s5243_s5 + $0x90] sm:$0xff] }
 0x143   : > { %2648 = vmatpush1.bf16.msra.mxu1 %v2647_v49  ;;  %v2559_v49 = vpack.c.bf16 %v1003_v46, %v1001_v45  ;;  %v1046_v45 = vld [vmem:[%s5243_s5 + $0x1e8] sm:$0xff]  ;;  %v1048_v46 = vld [vmem:[%s5243_s5 + $0x1f8] sm:$0xff] }
 0x144   : > { %2650 = vmatprep.subr.bf16.mxu1 %v2649_v39  ;;  %v1007_v39 = vld [vmem:[%s5243_s5 + $0xb0] sm:$0xff]  ;;  %v2601_v48 = vpack.c.bf16 %v1048_v46, %v1046_v45  ;;  %v1272_v45 = vld [vmem:[%s5243_s5 + $0x488] sm:$0xff]  ;;  %v1274_v46 = vld [vmem:[%s5243_s5 + $0x498] sm:$0xff] }
 0x147   : > { %2652 = vmatpush1.bf16.msra.mxu1 %v2651_v54  ;;  %v2563_v54 = vpack.c.bf16 %v1007_v39, %v1005_v51  ;;  %v1047_v51 = vld [vmem:[%s5243_s5 + $0x1f0] sm:$0xff] }
 0x148   : > { %2654 = vmatprep.subr.bf16.mxu1 %v2653_v57  ;;  %v1011_v57 = vld [vmem:[%s5243_s5 + $0xd0] sm:$0xff] }
 0x14b   : > { %2656 = vmatpush1.bf16.msra.mxu1 %v2655_v60  ;;  %v2567_v60 = vpack.c.bf16 %v1011_v57, %v1009_v56  ;;  %v1256_v56 = vld [vmem:[%s5243_s5 + $0x408] sm:$0xff]  ;;  %v1258_v57 = vld [vmem:[%s5243_s5 + $0x418] sm:$0xff] }
 0x14c   : > { %2658 = vmatprep.subr.bf16.mxu1 %v2657_v63  ;;  %v1015_v63 = vld [vmem:[%s5243_s5 + $0xf0] sm:$0xff]  ;;  %v2669_v59 = vpack.c.bf16 %v1258_v57, %v1256_v56  ;;  %v1276_v56 = vld [vmem:[%s5243_s5 + $0x4a8] sm:$0xff]  ;;  %v1278_v57 = vld [vmem:[%s5243_s5 + $0x4b8] sm:$0xff] }
 0x14f   : > { %2660 = vmatpush1.bf16.msra.mxu1 %v2659_v3  ;;  %v2571_v3 = vpack.c.bf16 %v1015_v63, %v1013_v62  ;;  %v1255_v62 = vld [vmem:[%s5243_s5 + $0x400] sm:$0xff]  ;;  %v1257_v63 = vld [vmem:[%s5243_s5 + $0x410] sm:$0xff] }
 0x150   : > { %2662 = vmatprep.subr.bf16.mxu1 %v2661_v6  ;;  %v1019_v6 = vld [vmem:[%s5243_s5 + $0x110] sm:$0xff] }
 0x153   : > { %2664 = vmatpush1.bf16.msra.mxu1 %v2663_v9  ;;  %v2575_v9 = vpack.c.bf16 %v1019_v6, %v1017_v5  ;;  %v901_v5 = vpop.permute.xlu0 %900 }
 0x1ed   : > { %v875_v14 = vpop.f32.mrb[0].mxu1 }
 0x1ee   : > { %v877_v17 = vpop.f32.mrb[1].mxu1  ;;  %v895_v22 = vadd.f32 %v2459_v10, %v875_v14  ;;  %v2577_v10 = vpack.c.bf16 %v1024_v8, %v1022_v7  ;;  %v1028_v14 = vld [vmem:[%s5243_s5 + $0x158] sm:$0xff]  ;;  %v1395_v8 = vld [vmem:[%s5243_s5 + $0x628] sm:$0xff] }
 0x1ef   : > { %v896_v20 = vadd.f32 %v892_v11, %v877_v17  ;;  %v1021_v11 = vld [vmem:[%s5243_s5 + $0x120] sm:$0xff]  ;;  %v2581_v16 = vpack.c.bf16 %v1028_v14, %v1026_v13  ;;  %v1262_v7 = vld [vmem:[%s5243_s5 + $0x438] sm:$0xff]  ;;  %v1261_v14 = vld [vmem:[%s5243_s5 + $0x430] sm:$0xff] }
 0x1f0   : > { %v2579_v15 = vpack.c.bf16 %v1023_v12, %v1021_v11  ;;  %v1025_v17 = vld [vmem:[%s5243_s5 + $0x140] sm:$0xff]  ;;  %v2671_v11 = vpack.c.bf16 %v1257_v63, %v1255_v62  ;;  %v2735_v12 = vpack.c.bf16 %v1392_v2, %v1390_v1  ;;  %v1277_v63 = vld [vmem:[%s5243_s5 + $0x4b0] sm:$0xff]  ;;  %v2689_v1 = vpack.c.bf16 %v1278_v57, %v1276_v56  ;;  %v1298_v56 = vld [vmem:[%s5243_s5 + $0x558] sm:$0xff] }
 0x1f1   : > { %2460 = vmatprep.subr.msk.mxu0 %vm907_vm4, %v896_v20  ;;  %v1032_v20 = vld [vmem:[%s5243_s5 + $0x178] sm:$0xff]  ;;  %v1259_v13 = vld [vmem:[%s5243_s5 + $0x420] sm:$0xff]  ;;  %v1431_v57 = vld [vmem:[%s5243_s5 + $0x748] sm:$0xff] }
 0x1f2   : > { %2461 = vmatpush1.msk.msra.mxu0 %vm907_vm4, %v895_v22  ;;  %v2585_v22 = vpack.c.bf16 %v1032_v20, %v1030_v19  ;;  %v1275_v62 = vld [vmem:[%s5243_s5 + $0x4a0] sm:$0xff] }
 0x1f3   : > { %2462 = vmatmul.mubr.msk.f32.vlgmr.msra.gmra.mrb[2].mxu0 %vm903_vm5, %v882_v23  ;;  %2542 = vmatprep.subr.bf16.mxu0 %v2541_v21  ;;  %v2583_v21 = vpack.c.bf16 %v1027_v18, %v1025_v17  ;;  %v1029_v23 = vld [vmem:[%s5243_s5 + $0x160] sm:$0xff]  ;;  %v1396_v17 = vld [vmem:[%s5243_s5 + $0x630] sm:$0xff]  ;;  %v1264_v18 = vld [vmem:[%s5243_s5 + $0x448] sm:$0xff] }
 0x1f4   : > { %2544 = vmatpush1.bf16.msra.mxu0 %v2543_v24  ;;  %v1031_v24 = vld [vmem:[%s5243_s5 + $0x170] sm:$0xff] }
 0x1f5   : > { %2546 = vmatprep.subr.bf16.mxu0 %v2545_v25  ;;  %v1034_v25 = vld [vmem:[%s5243_s5 + $0x188] sm:$0xff]  ;;  %v2587_v27 = vpack.c.bf16 %v1031_v24, %v1029_v23  ;;  %v1401_v23 = vld [vmem:[%s5243_s5 + $0x658] sm:$0xff]  ;;  %v2675_v24 = vpack.c.bf16 %v1261_v14, %v1259_v13  ;;  %v1281_v13 = vld [vmem:[%s5243_s5 + $0x4d0] sm:$0xff] }
 0x1f6   : > { %v2589_v28 = vpack.c.bf16 %v1036_v26, %v1034_v25  ;;  %v1263_v26 = vld [vmem:[%s5243_s5 + $0x440] sm:$0xff] }
 0x1f8   : > { %2548 = vmatpush1.bf16.msra.mxu0 %v2547_v30  ;;  %v1035_v30 = vld [vmem:[%s5243_s5 + $0x190] sm:$0xff] }
 0x1f9   : > { %2550 = vmatprep.subr.bf16.mxu0 %v2549_v31  ;;  %v1038_v31 = vld [vmem:[%s5243_s5 + $0x1a8] sm:$0xff]  ;;  %v2591_v33 = vpack.c.bf16 %v1035_v30, %v1033_v29  ;;  %v1398_v30 = vld [vmem:[%s5243_s5 + $0x640] sm:$0xff] }
 0x1fa   : > { %v2593_v34 = vpack.c.bf16 %v1040_v32, %v1038_v31  ;;  %v1400_v31 = vld [vmem:[%s5243_s5 + $0x650] sm:$0xff]  ;;  %v1268_v32 = vld [vmem:[%s5243_s5 + $0x468] sm:$0xff] }
 0x1fc   : > { %2552 = vmatpush1.bf16.msra.mxu0 %v2551_v36  ;;  %v1039_v36 = vld [vmem:[%s5243_s5 + $0x1b0] sm:$0xff] }
 0x1fd   : > { %2554 = vmatprep.subr.bf16.mxu0 %v2553_v37  ;;  %v1042_v37 = vld [vmem:[%s5243_s5 + $0x1c8] sm:$0xff]  ;;  %v2595_v40 = vpack.c.bf16 %v1039_v36, %v1037_v35  ;;  %v1405_v35 = vld [vmem:[%s5243_s5 + $0x678] sm:$0xff] }
 0x1fe   : > { %v2597_v41 = vpack.c.bf16 %v1044_v38, %v1042_v37  ;;  %v2743_v37 = vpack.c.bf16 %v1400_v31, %v1398_v30  ;;  %v1267_v38 = vld [vmem:[%s5243_s5 + $0x460] sm:$0xff]  ;;  %v1420_v30 = vld [vmem:[%s5243_s5 + $0x6f0] sm:$0xff]  ;;  %v1288_v31 = vld [vmem:[%s5243_s5 + $0x508] sm:$0xff] }
 0x200   : > { %2556 = vmatpush1.bf16.msra.mxu0 %v2555_v43  ;;  %v1043_v43 = vld [vmem:[%s5243_s5 + $0x1d0] sm:$0xff] }
 0x201   : > { %2558 = vmatprep.subr.bf16.mxu0 %v2557_v44  ;;  %v2599_v44 = vpack.c.bf16 %v1043_v43, %v1041_v42  ;;  %v1402_v43 = vld [vmem:[%s5243_s5 + $0x660] sm:$0xff] }
 0x204   : > { %2560 = vmatpush1.bf16.msra.mxu0 %v2559_v49  ;;  %v1183_v49 = vld [vmem:[%s5243_s5 + $0x3f8] sm:$0xff] }
 0x205   : > { %2562 = vmatprep.subr.bf16.mxu0 %v2561_v50  ;;  %v1045_v50 = vld [vmem:[%s5243_s5 + $0x1e0] sm:$0xff]  ;;  %v2665_v39 = vpack.c.bf16 %v1183_v49, %v1181_v47  ;;  %v1407_v47 = vld [vmem:[%s5243_s5 + $0x688] sm:$0xff] }
 0x206   : > { %v2603_v52 = vpack.c.bf16 %v1047_v51, %v1045_v50  ;;  %v1271_v51 = vld [vmem:[%s5243_s5 + $0x480] sm:$0xff] }
 0x207   : > { %2666 = vmatprep.subr.bf16.mxu1 %v2665_v39  ;;  %v1273_v39 = vld [vmem:[%s5243_s5 + $0x490] sm:$0xff] }
 0x208   : > { %2564 = vmatpush1.bf16.msra.mxu0 %v2563_v54  ;;  %v1182_v54 = vld [vmem:[%s5243_s5 + $0x3f0] sm:$0xff] }
 0x209   : > { %2566 = vmatprep.subr.bf16.mxu0 %v2565_v55  ;;  %v2667_v55 = vpack.c.bf16 %v1182_v54, %v1180_v53  ;;  %v1406_v54 = vld [vmem:[%s5243_s5 + $0x680] sm:$0xff] }
 0x20b   : > { %2668 = vmatpush1.bf16.msra.mxu1 %v2667_v55  ;;  %v1408_v55 = vld [vmem:[%s5243_s5 + $0x690] sm:$0xff] }
 0x20c   : > { %2568 = vmatpush1.bf16.msra.mxu0 %v2567_v60  ;;  %v1393_v60 = vld [vmem:[%s5243_s5 + $0x618] sm:$0xff] }
 0x20d   : > { %2570 = vmatprep.subr.bf16.mxu0 %v2569_v61  ;;  %v2733_v61 = vpack.c.bf16 %v1393_v60, %v1391_v58  ;;  %v1411_v58 = vld [vmem:[%s5243_s5 + $0x6a8] sm:$0xff]  ;;  %v2687_v60 = vpack.c.bf16 %v1273_v39, %v1271_v51  ;;  %v1293_v51 = vld [vmem:[%s5243_s5 + $0x530] sm:$0xff] }
 0x20f   : > { %2734 = vmatprep.subr.bf16.mxu1 %v2733_v61  ;;  %v2751_v61 = vpack.c.bf16 %v1408_v55, %v1406_v54  ;;  %v1428_v54 = vld [vmem:[%s5243_s5 + $0x730] sm:$0xff]  ;;  %v1296_v55 = vld [vmem:[%s5243_s5 + $0x548] sm:$0xff] }
 0x210   : > { %2572 = vmatpush1.bf16.msra.mxu0 %v2571_v3 }
 0x211   : > { %2574 = vmatprep.subr.bf16.mxu0 %v2573_v4  ;;  %v1260_v4 = vld [vmem:[%s5243_s5 + $0x428] sm:$0xff] }
 0x212   : > { %v2673_v19 = vpack.c.bf16 %v1262_v7, %v1260_v4  ;;  %v1412_v4 = vld [vmem:[%s5243_s5 + $0x6b0] sm:$0xff]  ;;  %v1415_v7 = vld [vmem:[%s5243_s5 + $0x6c8] sm:$0xff] }
 0x214   : > { %2576 = vmatpush1.bf16.msra.mxu0 %v2575_v9  ;;  %v1397_v9 = vld [vmem:[%s5243_s5 + $0x638] sm:$0xff] }
 0x215   : > { %2578 = vmatprep.subr.bf16.mxu0 %v2577_v10  ;;  %v2737_v20 = vpack.c.bf16 %v1397_v9, %v1395_v8  ;;  %v1417_v8 = vld [vmem:[%s5243_s5 + $0x6d8] sm:$0xff]  ;;  %v2691_v9 = vpack.c.bf16 %v1277_v63, %v1275_v62  ;;  %v1297_v62 = vld [vmem:[%s5243_s5 + $0x550] sm:$0xff]  ;;  %v2709_v63 = vpack.c.bf16 %v1298_v56, %v1296_v55  ;;  %v1451_v56 = vld [vmem:[%s5243_s5 + $0x7e8] sm:$0xff] }
 0x216   : > { %v1318_v55 = vld [vmem:[%s5243_s5 + $0x5f8] sm:$0xff] }
 0x218   : > { %2580 = vmatpush1.bf16.msra.mxu0 %v2579_v15 }
 0x219   : > { %2582 = vmatprep.subr.bf16.mxu0 %v2581_v16  ;;  %v1394_v16 = vld [vmem:[%s5243_s5 + $0x620] sm:$0xff] }
 0x21a   : > { %v2739_v25 = vpack.c.bf16 %v1396_v17, %v1394_v16  ;;  %v2757_v16 = vpack.c.bf16 %v1417_v8, %v1415_v7  ;;  %v1414_v17 = vld [vmem:[%s5243_s5 + $0x6c0] sm:$0xff]  ;;  %v1437_v7 = vld [vmem:[%s5243_s5 + $0x778] sm:$0xff] }
 0x21c   : > { %2584 = vmatpush1.bf16.msra.mxu0 %v2583_v21  ;;  %v1266_v21 = vld [vmem:[%s5243_s5 + $0x458] sm:$0xff] }
 0x21d   : > { %2586 = vmatprep.subr.bf16.mxu0 %v2585_v22  ;;  %v1399_v22 = vld [vmem:[%s5243_s5 + $0x648] sm:$0xff] }
 0x21e   : > { %v2741_v29 = vpack.c.bf16 %v1401_v23, %v1399_v22  ;;  %v1421_v22 = vld [vmem:[%s5243_s5 + $0x6f8] sm:$0xff] }
 0x220   : > { %2588 = vmatpush1.bf16.msra.mxu0 %v2587_v27  ;;  %v1265_v27 = vld [vmem:[%s5243_s5 + $0x450] sm:$0xff] }
 0x221   : > { %2590 = vmatprep.subr.bf16.mxu0 %v2589_v28  ;;  %v2677_v28 = vpack.c.bf16 %v1266_v21, %v1264_v18  ;;  %v2679_v36 = vpack.c.bf16 %v1265_v27, %v1263_v26  ;;  %v1416_v18 = vld [vmem:[%s5243_s5 + $0x6d0] sm:$0xff]  ;;  %v1419_v21 = vld [vmem:[%s5243_s5 + $0x6e8] sm:$0xff] }
 0x222   : > { %v1285_v26 = vld [vmem:[%s5243_s5 + $0x4f0] sm:$0xff] }
 0x224   : > { %2592 = vmatpush1.bf16.msra.mxu0 %v2591_v33  ;;  %v1270_v33 = vld [vmem:[%s5243_s5 + $0x478] sm:$0xff] }
 0x225   : > { %2594 = vmatprep.subr.bf16.mxu0 %v2593_v34  ;;  %v1403_v34 = vld [vmem:[%s5243_s5 + $0x668] sm:$0xff] }
 0x226   : > { %v2745_v42 = vpack.c.bf16 %v1405_v35, %v1403_v34  ;;  %v1425_v34 = vld [vmem:[%s5243_s5 + $0x718] sm:$0xff] }
 0x228   : > { %2596 = vmatpush1.bf16.msra.mxu0 %v2595_v40  ;;  %v1269_v40 = vld [vmem:[%s5243_s5 + $0x470] sm:$0xff] }
 0x229   : > { %2598 = vmatprep.subr.bf16.mxu0 %v2597_v41  ;;  %v2681_v41 = vpack.c.bf16 %v1270_v33, %v1268_v32  ;;  %v2683_v49 = vpack.c.bf16 %v1269_v40, %v1267_v38  ;;  %v1290_v32 = vld [vmem:[%s5243_s5 + $0x518] sm:$0xff]  ;;  %v1423_v33 = vld [vmem:[%s5243_s5 + $0x708] sm:$0xff]  ;;  %v1289_v38 = vld [vmem:[%s5243_s5 + $0x510] sm:$0xff] }
 0x22a   : > { %v2701_v40 = vpack.c.bf16 %v1290_v32, %v1288_v31  ;;  %v1310_v31 = vld [vmem:[%s5243_s5 + $0x5b8] sm:$0xff]  ;;  %v1443_v32 = vld [vmem:[%s5243_s5 + $0x7a8] sm:$0xff] }
 0x22c   : > { %2600 = vmatpush1.bf16.msra.mxu0 %v2599_v44  ;;  %v1404_v44 = vld [vmem:[%s5243_s5 + $0x670] sm:$0xff] }
 0x22d   : > { %2602 = vmatprep.subr.bf16.mxu0 %v2601_v48  ;;  %v1409_v48 = vld [vmem:[%s5243_s5 + $0x698] sm:$0xff]  ;;  %v2747_v50 = vpack.c.bf16 %v1404_v44, %v1402_v43  ;;  %v1424_v43 = vld [vmem:[%s5243_s5 + $0x710] sm:$0xff]  ;;  %v1292_v44 = vld [vmem:[%s5243_s5 + $0x528] sm:$0xff] }
 0x22e   : > { %v2749_v53 = vpack.c.bf16 %v1409_v48, %v1407_v47  ;;  %v1429_v47 = vld [vmem:[%s5243_s5 + $0x738] sm:$0xff] }
 0x230   : > { %2604 = vmatpush1.bf16.msra.mxu0 %v2603_v52  ;;  %v2685_v52 = vpack.c.bf16 %v1274_v46, %v1272_v45  ;;  %v1294_v45 = vld [vmem:[%s5243_s5 + $0x538] sm:$0xff]  ;;  %v1427_v46 = vld [vmem:[%s5243_s5 + $0x728] sm:$0xff] }
 0x231   : > { %2670 = vmatprep.subr.bf16.mxu0 %v2669_v59  ;;  %v1413_v59 = vld [vmem:[%s5243_s5 + $0x6b8] sm:$0xff]  ;;  %v2705_v39 = vpack.c.bf16 %v1294_v45, %v1292_v44  ;;  %v1447_v45 = vld [vmem:[%s5243_s5 + $0x7c8] sm:$0xff] }
 0x232   : > { %v2753_v2 = vpack.c.bf16 %v1413_v59, %v1411_v58  ;;  %v1433_v58 = vld [vmem:[%s5243_s5 + $0x758] sm:$0xff] }
 0x233   : > { %v1314_v44 = vld [vmem:[%s5243_s5 + $0x5d8] sm:$0xff] }
 0x2c6   : > { %v980_v3 = vpop.f32.mrb[2].mxu0 }
 0x2c7   : > { %v982_v6 = vpop.f32.mrb[3].mxu0  ;;  %v3895_v15 = vadd.f32 %v980_v3, %v901_v5  ;;  %v1410_v3 = vld [vmem:[%s5243_s5 + $0x6a0] sm:$0xff] }
 0x2c8   : > { %v3887_v10 = vadd.f32 %v982_v6, %v901_v5  ;;  %v1280_v5 = vld [vmem:[%s5243_s5 + $0x4c8] sm:$0xff]  ;;  %v1282_v6 = vld [vmem:[%s5243_s5 + $0x4d8] sm:$0xff] }
 0x2c9   : > { %v2693_v14 = vpack.c.bf16 %v1282_v6, %v1280_v5  ;;  %v1302_v5 = vld [vmem:[%s5243_s5 + $0x578] sm:$0xff]  ;;  %v1435_v6 = vld [vmem:[%s5243_s5 + $0x768] sm:$0xff] }
 0x2ca   : > { %1113 = vmatprep.mubr.f32.mxu0 %v3887_v10  ;;  %1248 = vmatprep.mubr.f32.mxu1 %v3887_v10 }
 0x2cb   : > { %1114 = vmatmul.mubr.f32.vlgmr.msra.gmra.mrb[4].mxu0 %v3895_v15  ;;  %1249 = vmatmul.mubr.f32.vlgmr.msra.gmra.mrb[2].mxu1 %v3895_v15 }
 0x2cc   : > { %2672 = vmatpush1.bf16.msra.mxu0 %v2671_v11  ;;  %2736 = vmatpush1.bf16.msra.mxu1 %v2735_v12  ;;  %v2755_v11 = vpack.c.bf16 %v1412_v4, %v1410_v3  ;;  %v1279_v12 = vld [vmem:[%s5243_s5 + $0x4c0] sm:$0xff]  ;;  %v1432_v3 = vld [vmem:[%s5243_s5 + $0x750] sm:$0xff]  ;;  %v1300_v4 = vld [vmem:[%s5243_s5 + $0x568] sm:$0xff] }
 0x2cd   : > { %1383 = vmatprep.mubr.f32.mxu0 %v3887_v10  ;;  %1518 = vmatprep.mubr.f32.mxu1 %v3887_v10  ;;  %v2695_v23 = vpack.c.bf16 %v1281_v13, %v1279_v12  ;;  %v1301_v12 = vld [vmem:[%s5243_s5 + $0x570] sm:$0xff]  ;;  %v2713_v13 = vpack.c.bf16 %v1302_v5, %v1300_v4  ;;  %v1528_v4 = vld [vmem:[%s5243_s5 + $0x818] sm:$0xff]  ;;  %v1661_v5 = vld [vmem:[%s5243_s5 + $0xa08] sm:$0xff] }
 0x2ce   : > { %2674 = vmatprep.subr.bf16.mxu0 %v2673_v19  ;;  %2738 = vmatprep.subr.bf16.mxu1 %v2737_v20  ;;  %v1284_v19 = vld [vmem:[%s5243_s5 + $0x4e8] sm:$0xff]  ;;  %v1286_v20 = vld [vmem:[%s5243_s5 + $0x4f8] sm:$0xff] }
 0x2cf   : > { %v2697_v27 = vpack.c.bf16 %v1286_v20, %v1284_v19  ;;  %v1306_v19 = vld [vmem:[%s5243_s5 + $0x598] sm:$0xff]  ;;  %v1439_v20 = vld [vmem:[%s5243_s5 + $0x788] sm:$0xff] }
 0x2d0   : > { %2676 = vmatpush1.bf16.msra.mxu0 %v2675_v24  ;;  %2740 = vmatpush1.bf16.msra.mxu1 %v2739_v25  ;;  %v2759_v24 = vpack.c.bf16 %v1416_v18, %v1414_v17  ;;  %v1283_v25 = vld [vmem:[%s5243_s5 + $0x4e0] sm:$0xff]  ;;  %v1436_v17 = vld [vmem:[%s5243_s5 + $0x770] sm:$0xff]  ;;  %v1304_v18 = vld [vmem:[%s5243_s5 + $0x588] sm:$0xff] }
 0x2d1   : > { %2678 = vmatprep.subr.bf16.mxu0 %v2677_v28  ;;  %2742 = vmatprep.subr.bf16.mxu1 %v2741_v29  ;;  %v2761_v28 = vpack.c.bf16 %v1421_v22, %v1419_v21  ;;  %v1418_v29 = vld [vmem:[%s5243_s5 + $0x6e0] sm:$0xff]  ;;  %v2699_v35 = vpack.c.bf16 %v1285_v26, %v1283_v25  ;;  %v1441_v21 = vld [vmem:[%s5243_s5 + $0x798] sm:$0xff]  ;;  %v1305_v25 = vld [vmem:[%s5243_s5 + $0x590] sm:$0xff]  ;;  %v2717_v26 = vpack.c.bf16 %v1306_v19, %v1304_v18 }
 0x2d2   : > { %v1532_v18 = vld [vmem:[%s5243_s5 + $0x838] sm:$0xff]  ;;  %v1665_v19 = vld [vmem:[%s5243_s5 + $0xa28] sm:$0xff] }
 0x2d4   : > { %2680 = vmatpush1.bf16.msra.mxu0 %v2679_v36  ;;  %2744 = vmatpush1.bf16.msra.mxu1 %v2743_v37  ;;  %v2763_v36 = vpack.c.bf16 %v1420_v30, %v1418_v29  ;;  %v1287_v37 = vld [vmem:[%s5243_s5 + $0x500] sm:$0xff]  ;;  %v1440_v29 = vld [vmem:[%s5243_s5 + $0x790] sm:$0xff]  ;;  %v1308_v30 = vld [vmem:[%s5243_s5 + $0x5a8] sm:$0xff] }
 0x2d5   : > { %2682 = vmatprep.subr.bf16.mxu0 %v2681_v41  ;;  %2746 = vmatprep.subr.bf16.mxu1 %v2745_v42  ;;  %v2765_v41 = vpack.c.bf16 %v1425_v34, %v1423_v33  ;;  %v1422_v42 = vld [vmem:[%s5243_s5 + $0x700] sm:$0xff]  ;;  %v2703_v48 = vpack.c.bf16 %v1289_v38, %v1287_v37  ;;  %v1445_v33 = vld [vmem:[%s5243_s5 + $0x7b8] sm:$0xff]  ;;  %v1309_v37 = vld [vmem:[%s5243_s5 + $0x5b0] sm:$0xff]  ;;  %v2721_v38 = vpack.c.bf16 %v1310_v31, %v1308_v30 }
 0x2d6   : > { %v1536_v30 = vld [vmem:[%s5243_s5 + $0x858] sm:$0xff]  ;;  %v1669_v31 = vld [vmem:[%s5243_s5 + $0xa48] sm:$0xff] }
 0x2d8   : > { %2684 = vmatpush1.bf16.msra.mxu0 %v2683_v49  ;;  %2748 = vmatpush1.bf16.msra.mxu1 %v2747_v50  ;;  %v2767_v49 = vpack.c.bf16 %v1424_v43, %v1422_v42  ;;  %v1291_v50 = vld [vmem:[%s5243_s5 + $0x520] sm:$0xff]  ;;  %v1444_v42 = vld [vmem:[%s5243_s5 + $0x7b0] sm:$0xff]  ;;  %v1312_v43 = vld [vmem:[%s5243_s5 + $0x5c8] sm:$0xff] }
 0x2d9   : > { %2686 = vmatprep.subr.bf16.mxu0 %v2685_v52  ;;  %2750 = vmatprep.subr.bf16.mxu1 %v2749_v53  ;;  %v2769_v52 = vpack.c.bf16 %v1429_v47, %v1427_v46  ;;  %v1426_v53 = vld [vmem:[%s5243_s5 + $0x720] sm:$0xff]  ;;  %v2707_v59 = vpack.c.bf16 %v1293_v51, %v1291_v50  ;;  %v1449_v46 = vld [vmem:[%s5243_s5 + $0x7d8] sm:$0xff]  ;;  %v1313_v50 = vld [vmem:[%s5243_s5 + $0x5d0] sm:$0xff]  ;;  %v2725_v51 = vpack.c.bf16 %v1314_v44, %v1312_v43 }
 0x2da   : > { %v1540_v43 = vld [vmem:[%s5243_s5 + $0x878] sm:$0xff]  ;;  %v1673_v44 = vld [vmem:[%s5243_s5 + $0xa68] sm:$0xff] }
 0x2dc   : > { %2688 = vmatpush1.bf16.msra.mxu0 %v2687_v60  ;;  %2752 = vmatpush1.bf16.msra.mxu1 %v2751_v61  ;;  %v2771_v60 = vpack.c.bf16 %v1428_v54, %v1426_v53  ;;  %v1295_v61 = vld [vmem:[%s5243_s5 + $0x540] sm:$0xff]  ;;  %v1448_v53 = vld [vmem:[%s5243_s5 + $0x7d0] sm:$0xff]  ;;  %v1316_v54 = vld [vmem:[%s5243_s5 + $0x5e8] sm:$0xff] }
 0x2dd   : > { %2690 = vmatprep.subr.bf16.mxu0 %v2689_v1  ;;  %2754 = vmatprep.subr.bf16.mxu1 %v2753_v2  ;;  %v2773_v1 = vpack.c.bf16 %v1433_v58, %v1431_v57  ;;  %v1430_v2 = vld [vmem:[%s5243_s5 + $0x740] sm:$0xff]  ;;  %v2711_v8 = vpack.c.bf16 %v1297_v62, %v1295_v61  ;;  %v1453_v57 = vld [vmem:[%s5243_s5 + $0x7f8] sm:$0xff]  ;;  %v1317_v61 = vld [vmem:[%s5243_s5 + $0x5f0] sm:$0xff]  ;;  %v2729_v62 = vpack.c.bf16 %v1318_v55, %v1316_v54 }
 0x2de   : > { %v1544_v54 = vld [vmem:[%s5243_s5 + $0x898] sm:$0xff]  ;;  %v1677_v55 = vld [vmem:[%s5243_s5 + $0xa88] sm:$0xff] }
 0x2e0   : > { %2692 = vmatpush1.bf16.msra.mxu0 %v2691_v9  ;;  %2756 = vmatpush1.bf16.msra.mxu1 %v2755_v11  ;;  %v2775_v9 = vpack.c.bf16 %v1432_v3, %v1430_v2  ;;  %v1299_v11 = vld [vmem:[%s5243_s5 + $0x560] sm:$0xff]  ;;  %v1452_v2 = vld [vmem:[%s5243_s5 + $0x7f0] sm:$0xff]  ;;  %v1526_v3 = vld [vmem:[%s5243_s5 + $0x808] sm:$0xff] }
 0x2e1   : > { %2694 = vmatprep.subr.bf16.mxu0 %v2693_v14  ;;  %2758 = vmatprep.subr.bf16.mxu1 %v2757_v16  ;;  %v2777_v14 = vpack.c.bf16 %v1437_v7, %v1435_v6  ;;  %v1434_v16 = vld [vmem:[%s5243_s5 + $0x760] sm:$0xff]  ;;  %v2715_v22 = vpack.c.bf16 %v1301_v12, %v1299_v11  ;;  %v1663_v6 = vld [vmem:[%s5243_s5 + $0xa18] sm:$0xff] }
 0x2e2   : > { %v2861_v11 = vpack.c.bf16 %v1663_v6, %v1661_v5  ;;  %v1525_v12 = vld [vmem:[%s5243_s5 + $0x800] sm:$0xff]  ;;  %v1683_v5 = vld [vmem:[%s5243_s5 + $0xab8] sm:$0xff] }
 0x2e4   : > { %2696 = vmatpush1.bf16.msra.mxu0 %v2695_v23  ;;  %2760 = vmatpush1.bf16.msra.mxu1 %v2759_v24  ;;  %v2779_v23 = vpack.c.bf16 %v1436_v17, %v1434_v16  ;;  %v1303_v24 = vld [vmem:[%s5243_s5 + $0x580] sm:$0xff]  ;;  %v1662_v16 = vld [vmem:[%s5243_s5 + $0xa10] sm:$0xff]  ;;  %v1530_v17 = vld [vmem:[%s5243_s5 + $0x828] sm:$0xff] }
 0x2e5   : > { %2698 = vmatprep.subr.bf16.mxu0 %v2697_v27  ;;  %2762 = vmatprep.subr.bf16.mxu1 %v2761_v28  ;;  %v2781_v27 = vpack.c.bf16 %v1441_v21, %v1439_v20  ;;  %v1438_v28 = vld [vmem:[%s5243_s5 + $0x780] sm:$0xff]  ;;  %v2719_v34 = vpack.c.bf16 %v1305_v25, %v1303_v24  ;;  %v1667_v20 = vld [vmem:[%s5243_s5 + $0xa38] sm:$0xff]  ;;  %v1531_v24 = vld [vmem:[%s5243_s5 + $0x830] sm:$0xff] }
 0x2e6   : > { %v1664_v25 = vld [vmem:[%s5243_s5 + $0xa20] sm:$0xff] }
 0x2e8   : > { %2700 = vmatpush1.bf16.msra.mxu0 %v2699_v35  ;;  %2764 = vmatpush1.bf16.msra.mxu1 %v2763_v36  ;;  %v2783_v35 = vpack.c.bf16 %v1440_v29, %v1438_v28  ;;  %v1307_v36 = vld [vmem:[%s5243_s5 + $0x5a0] sm:$0xff]  ;;  %v1666_v28 = vld [vmem:[%s5243_s5 + $0xa30] sm:$0xff]  ;;  %v1534_v29 = vld [vmem:[%s5243_s5 + $0x848] sm:$0xff] }
 0x2e9   : > { %2702 = vmatprep.subr.bf16.mxu0 %v2701_v40  ;;  %2766 = vmatprep.subr.bf16.mxu1 %v2765_v41  ;;  %v2785_v40 = vpack.c.bf16 %v1445_v33, %v1443_v32  ;;  %v1442_v41 = vld [vmem:[%s5243_s5 + $0x7a0] sm:$0xff]  ;;  %v2723_v47 = vpack.c.bf16 %v1309_v37, %v1307_v36  ;;  %v1671_v32 = vld [vmem:[%s5243_s5 + $0xa58] sm:$0xff]  ;;  %v1535_v37 = vld [vmem:[%s5243_s5 + $0x850] sm:$0xff] }
 0x2ea   : > { %v1533_v36 = vld [vmem:[%s5243_s5 + $0x840] sm:$0xff] }
 0x2ec   : > { %2704 = vmatpush1.bf16.msra.mxu0 %v2703_v48  ;;  %2768 = vmatpush1.bf16.msra.mxu1 %v2767_v49  ;;  %v2787_v48 = vpack.c.bf16 %v1444_v42, %v1442_v41  ;;  %v1311_v49 = vld [vmem:[%s5243_s5 + $0x5c0] sm:$0xff]  ;;  %v1670_v41 = vld [vmem:[%s5243_s5 + $0xa50] sm:$0xff]  ;;  %v1538_v42 = vld [vmem:[%s5243_s5 + $0x868] sm:$0xff] }
 0x2ed   : > { %2706 = vmatprep.subr.bf16.mxu0 %v2705_v39  ;;  %2770 = vmatprep.subr.bf16.mxu1 %v2769_v52  ;;  %v2789_v39 = vpack.c.bf16 %v1449_v46, %v1447_v45  ;;  %v1446_v52 = vld [vmem:[%s5243_s5 + $0x7c0] sm:$0xff]  ;;  %v2727_v58 = vpack.c.bf16 %v1313_v50, %v1311_v49  ;;  %v1675_v45 = vld [vmem:[%s5243_s5 + $0xa78] sm:$0xff]  ;;  %v2807_v46 = vpack.c.bf16 %v1535_v37, %v1533_v36  ;;  %v1539_v50 = vld [vmem:[%s5243_s5 + $0x870] sm:$0xff] }
 0x2ee   : > { %v1537_v49 = vld [vmem:[%s5243_s5 + $0x860] sm:$0xff]  ;;  %v1555_v36 = vld [vmem:[%s5243_s5 + $0x8f0] sm:$0xff] }
 0x2ef   : > { %v1688_v37 = vld [vmem:[%s5243_s5 + $0xae0] sm:$0xff] }
 0x2f0   : > { %2708 = vmatpush1.bf16.msra.mxu0 %v2707_v59  ;;  %2772 = vmatpush1.bf16.msra.mxu1 %v2771_v60  ;;  %v2791_v59 = vpack.c.bf16 %v1448_v53, %v1446_v52  ;;  %v1315_v60 = vld [vmem:[%s5243_s5 + $0x5e0] sm:$0xff]  ;;  %v1674_v52 = vld [vmem:[%s5243_s5 + $0xa70] sm:$0xff]  ;;  %v1542_v53 = vld [vmem:[%s5243_s5 + $0x888] sm:$0xff] }
 0x2f1   : > { %2710 = vmatprep.subr.bf16.mxu0 %v2709_v63  ;;  %2774 = vmatprep.subr.bf16.mxu1 %v2773_v1  ;;  %v2793_v63 = vpack.c.bf16 %v1453_v57, %v1451_v56  ;;  %v1450_v1 = vld [vmem:[%s5243_s5 + $0x7e0] sm:$0xff]  ;;  %v2731_v7 = vpack.c.bf16 %v1317_v61, %v1315_v60  ;;  %v1679_v56 = vld [vmem:[%s5243_s5 + $0xa98] sm:$0xff]  ;;  %v2811_v57 = vpack.c.bf16 %v1539_v50, %v1537_v49  ;;  %v1543_v61 = vld [vmem:[%s5243_s5 + $0x890] sm:$0xff] }
 0x2f2   : > { %v1541_v60 = vld [vmem:[%s5243_s5 + $0x880] sm:$0xff]  ;;  %v1559_v49 = vld [vmem:[%s5243_s5 + $0x910] sm:$0xff] }
 0x2f3   : > { %v2815_v6 = vpack.c.bf16 %v1543_v61, %v1541_v60  ;;  %v1692_v50 = vld [vmem:[%s5243_s5 + $0xb00] sm:$0xff]  ;;  %v1563_v60 = vld [vmem:[%s5243_s5 + $0x930] sm:$0xff] }
 0x2f4   : > { %2712 = vmatpush1.bf16.msra.mxu0 %v2711_v8  ;;  %2776 = vmatpush1.bf16.msra.mxu1 %v2775_v9  ;;  %v2795_v8 = vpack.c.bf16 %v1452_v2, %v1450_v1  ;;  %v2797_v9 = vpack.c.bf16 %v1528_v4, %v1526_v3  ;;  %v1678_v1 = vld [vmem:[%s5243_s5 + $0xa90] sm:$0xff]  ;;  %v1546_v2 = vld [vmem:[%s5243_s5 + $0x8a8] sm:$0xff]  ;;  %v1548_v3 = vld [vmem:[%s5243_s5 + $0x8b8] sm:$0xff] }
 0x2f5   : > { %2714 = vmatprep.subr.bf16.mxu0 %v2713_v13  ;;  %2778 = vmatprep.subr.bf16.mxu1 %v2777_v14  ;;  %v1527_v13 = vld [vmem:[%s5243_s5 + $0x810] sm:$0xff]  ;;  %v1660_v14 = vld [vmem:[%s5243_s5 + $0xa00] sm:$0xff]  ;;  %v1681_v4 = vld [vmem:[%s5243_s5 + $0xaa8] sm:$0xff] }
 0x2f6   : > { %v2799_v21 = vpack.c.bf16 %v1527_v13, %v1525_v12  ;;  %v1680_v12 = vld [vmem:[%s5243_s5 + $0xaa0] sm:$0xff]  ;;  %v2881_v13 = vpack.c.bf16 %v1683_v5, %v1681_v4  ;;  %v1703_v4 = vld [vmem:[%s5243_s5 + $0xb58] sm:$0xff] }
 0x2f7   : > { %v1696_v61 = vld [vmem:[%s5243_s5 + $0xb20] sm:$0xff] }
 0x2f8   : > { %2716 = vmatpush1.bf16.msra.mxu0 %v2715_v22  ;;  %2780 = vmatpush1.bf16.msra.mxu1 %v2779_v23  ;;  %v2863_v22 = vpack.c.bf16 %v1662_v16, %v1660_v14  ;;  %v1529_v23 = vld [vmem:[%s5243_s5 + $0x820] sm:$0xff]  ;;  %v1682_v14 = vld [vmem:[%s5243_s5 + $0xab0] sm:$0xff]  ;;  %v1550_v16 = vld [vmem:[%s5243_s5 + $0x8c8] sm:$0xff] }
 0x2f9   : > { %2718 = vmatprep.subr.bf16.mxu0 %v2717_v26  ;;  %2782 = vmatprep.subr.bf16.mxu1 %v2781_v27  ;;  %v2801_v26 = vpack.c.bf16 %v1532_v18, %v1530_v17  ;;  %v2865_v27 = vpack.c.bf16 %v1667_v20, %v1665_v19  ;;  %v2803_v33 = vpack.c.bf16 %v1531_v24, %v1529_v23  ;;  %v1552_v17 = vld [vmem:[%s5243_s5 + $0x8d8] sm:$0xff]  ;;  %v1685_v18 = vld [vmem:[%s5243_s5 + $0xac8] sm:$0xff]  ;;  %v1549_v23 = vld [vmem:[%s5243_s5 + $0x8c0] sm:$0xff] }
 0x2fa   : > { %v1687_v19 = vld [vmem:[%s5243_s5 + $0xad8] sm:$0xff]  ;;  %v1551_v24 = vld [vmem:[%s5243_s5 + $0x8d0] sm:$0xff] }
 0x2fc   : > { %2720 = vmatpush1.bf16.msra.mxu0 %v2719_v34  ;;  %2784 = vmatpush1.bf16.msra.mxu1 %v2783_v35  ;;  %v2867_v34 = vpack.c.bf16 %v1666_v28, %v1664_v25  ;;  %v2805_v35 = vpack.c.bf16 %v1536_v30, %v1534_v29  ;;  %v1684_v25 = vld [vmem:[%s5243_s5 + $0xac0] sm:$0xff]  ;;  %v1554_v28 = vld [vmem:[%s5243_s5 + $0x8e8] sm:$0xff]  ;;  %v1556_v29 = vld [vmem:[%s5243_s5 + $0x8f8] sm:$0xff] }
 0x2fd   : > { %2722 = vmatprep.subr.bf16.mxu0 %v2721_v38  ;;  %2786 = vmatprep.subr.bf16.mxu1 %v2785_v40  ;;  %v1668_v38 = vld [vmem:[%s5243_s5 + $0xa40] sm:$0xff]  ;;  %v2869_v40 = vpack.c.bf16 %v1671_v32, %v1669_v31  ;;  %v1689_v30 = vld [vmem:[%s5243_s5 + $0xae8] sm:$0xff]  ;;  %v1691_v31 = vld [vmem:[%s5243_s5 + $0xaf8] sm:$0xff]  ;;  %v2823_v32 = vpack.c.bf16 %v1551_v24, %v1549_v23 }
 0x2fe   : > { %v1571_v23 = vld [vmem:[%s5243_s5 + $0x970] sm:$0xff]  ;;  %v1704_v24 = vld [vmem:[%s5243_s5 + $0xb60] sm:$0xff] }
 0x300   : > { %2724 = vmatpush1.bf16.msra.mxu0 %v2723_v47  ;;  %2788 = vmatpush1.bf16.msra.mxu1 %v2787_v48  ;;  %v2871_v47 = vpack.c.bf16 %v1670_v41, %v1668_v38  ;;  %v2809_v48 = vpack.c.bf16 %v1540_v43, %v1538_v42  ;;  %v2889_v38 = vpack.c.bf16 %v1691_v31, %v1689_v30  ;;  %v1558_v41 = vld [vmem:[%s5243_s5 + $0x908] sm:$0xff]  ;;  %v1560_v42 = vld [vmem:[%s5243_s5 + $0x918] sm:$0xff] }
 0x301   : > { %2726 = vmatprep.subr.bf16.mxu0 %v2725_v51  ;;  %2790 = vmatprep.subr.bf16.mxu1 %v2789_v39  ;;  %v1672_v51 = vld [vmem:[%s5243_s5 + $0xa60] sm:$0xff]  ;;  %v2873_v39 = vpack.c.bf16 %v1675_v45, %v1673_v44  ;;  %v1693_v43 = vld [vmem:[%s5243_s5 + $0xb08] sm:$0xff]  ;;  %v1695_v44 = vld [vmem:[%s5243_s5 + $0xb18] sm:$0xff] }
 0x302   : > { %v1711_v30 = vld [vmem:[%s5243_s5 + $0xb98] sm:$0xff] }
 0x304   : > { %2728 = vmatpush1.bf16.msra.mxu0 %v2727_v58  ;;  %2792 = vmatpush1.bf16.msra.mxu1 %v2791_v59  ;;  %v2875_v58 = vpack.c.bf16 %v1674_v52, %v1672_v51  ;;  %v2813_v59 = vpack.c.bf16 %v1544_v54, %v1542_v53  ;;  %v2893_v51 = vpack.c.bf16 %v1695_v44, %v1693_v43  ;;  %v1562_v52 = vld [vmem:[%s5243_s5 + $0x928] sm:$0xff]  ;;  %v1564_v53 = vld [vmem:[%s5243_s5 + $0x938] sm:$0xff] }
 0x305   : > { %2730 = vmatprep.subr.bf16.mxu0 %v2729_v62  ;;  %2794 = vmatprep.subr.bf16.mxu1 %v2793_v63  ;;  %v1676_v62 = vld [vmem:[%s5243_s5 + $0xa80] sm:$0xff]  ;;  %v2877_v63 = vpack.c.bf16 %v1679_v56, %v1677_v55  ;;  %v1697_v54 = vld [vmem:[%s5243_s5 + $0xb28] sm:$0xff]  ;;  %v1699_v55 = vld [vmem:[%s5243_s5 + $0xb38] sm:$0xff] }
 0x306   : > { %v1715_v43 = vld [vmem:[%s5243_s5 + $0xbb8] sm:$0xff] }
 0x308   : > { %2732 = vmatpush1.bf16.msra.mxu0 %v2731_v7  ;;  %2796 = vmatpush1.bf16.msra.mxu1 %v2795_v8  ;;  %v2879_v7 = vpack.c.bf16 %v1678_v1, %v1676_v62  ;;  %v2817_v8 = vpack.c.bf16 %v1548_v3, %v1546_v2  ;;  %v2897_v62 = vpack.c.bf16 %v1699_v55, %v1697_v54  ;;  %v1566_v1 = vld [vmem:[%s5243_s5 + $0x948] sm:$0xff]  ;;  %v1568_v2 = vld [vmem:[%s5243_s5 + $0x958] sm:$0xff] }
 0x309   : > { %2798 = vmatprep.subr.bf16.mxu0 %v2797_v9  ;;  %2862 = vmatprep.subr.bf16.mxu1 %v2861_v11  ;;  %v1545_v9 = vld [vmem:[%s5243_s5 + $0x8a0] sm:$0xff]  ;;  %v1547_v11 = vld [vmem:[%s5243_s5 + $0x8b0] sm:$0xff]  ;;  %v1701_v3 = vld [vmem:[%s5243_s5 + $0xb48] sm:$0xff] }
 0x30a   : > { %v2819_v20 = vpack.c.bf16 %v1547_v11, %v1545_v9  ;;  %v1567_v9 = vld [vmem:[%s5243_s5 + $0x950] sm:$0xff]  ;;  %v1700_v11 = vld [vmem:[%s5243_s5 + $0xb40] sm:$0xff]  ;;  %v1719_v54 = vld [vmem:[%s5243_s5 + $0xbd8] sm:$0xff] }
 0x30b   : > { %1384 = vmatmul.mubr.f32.vlgmr.msra.gmra.mrb[6].mxu0 %v3895_v15  ;;  %1519 = vmatmul.mubr.f32.vlgmr.msra.gmra.mrb[4].mxu1 %v3895_v15 }
 0x30c   : > { %2800 = vmatpush1.bf16.msra.mxu0 %v2799_v21  ;;  %1653 = vmatprep.mubr.f32.mxu0 %v3887_v10  ;;  %v2883_v21 = vpack.c.bf16 %v1682_v14, %v1680_v12  ;;  %v2901_v12 = vpack.c.bf16 %v1703_v4, %v1701_v3  ;;  %v1570_v14 = vld [vmem:[%s5243_s5 + $0x968] sm:$0xff]  ;;  %v1723_v3 = vld [vmem:[%s5243_s5 + $0xbf8] sm:$0xff] }
 0x30d   : > { %2864 = vmatpush1.bf16.msra.mxu1 %v2863_v22  ;;  %1788 = vmatprep.mubr.f32.mxu1 %v3887_v10  ;;  %v2821_v22 = vpack.c.bf16 %v1552_v17, %v1550_v16  ;;  %v1572_v16 = vld [vmem:[%s5243_s5 + $0x978] sm:$0xff]  ;;  %v1705_v17 = vld [vmem:[%s5243_s5 + $0xb68] sm:$0xff] }
 0x30e   : > { %2802 = vmatprep.subr.bf16.mxu0 %v2801_v26  ;;  %2866 = vmatprep.subr.bf16.mxu1 %v2865_v27  ;;  %v2885_v26 = vpack.c.bf16 %v1687_v19, %v1685_v18  ;;  %v1686_v27 = vld [vmem:[%s5243_s5 + $0xad0] sm:$0xff]  ;;  %v1707_v18 = vld [vmem:[%s5243_s5 + $0xb78] sm:$0xff] }
 0x310   : > { %2804 = vmatpush1.bf16.msra.mxu0 %v2803_v33  ;;  %v2887_v33 = vpack.c.bf16 %v1686_v27, %v1684_v25  ;;  %v2905_v25 = vpack.c.bf16 %v1707_v18, %v1705_v17  ;;  %v1574_v27 = vld [vmem:[%s5243_s5 + $0x988] sm:$0xff]  ;;  %v1933_v17 = vld [vmem:[%s5243_s5 + $0xe18] sm:$0xff] }
 0x311   : > { %2868 = vmatpush1.bf16.msra.mxu1 %v2867_v34  ;;  %2806 = vmatprep.subr.bf16.mxu0 %v2805_v35  ;;  %v2825_v34 = vpack.c.bf16 %v1556_v29, %v1554_v28  ;;  %v1553_v35 = vld [vmem:[%s5243_s5 + $0x8e0] sm:$0xff]  ;;  %v1576_v28 = vld [vmem:[%s5243_s5 + $0x998] sm:$0xff]  ;;  %v1709_v29 = vld [vmem:[%s5243_s5 + $0xb88] sm:$0xff] }
 0x312   : > { %2870 = vmatprep.subr.bf16.mxu1 %v2869_v40  ;;  %v1690_v40 = vld [vmem:[%s5243_s5 + $0xaf0] sm:$0xff]  ;;  %v2827_v45 = vpack.c.bf16 %v1555_v36, %v1553_v35  ;;  %v1708_v36 = vld [vmem:[%s5243_s5 + $0xb80] sm:$0xff] }
 0x313   : > { %v1575_v35 = vld [vmem:[%s5243_s5 + $0x990] sm:$0xff] }
 0x314   : > { %2808 = vmatpush1.bf16.msra.mxu0 %v2807_v46  ;;  %v2891_v46 = vpack.c.bf16 %v1690_v40, %v1688_v37  ;;  %v2909_v37 = vpack.c.bf16 %v1711_v30, %v1709_v29  ;;  %v1578_v40 = vld [vmem:[%s5243_s5 + $0x9a8] sm:$0xff]  ;;  %v1937_v30 = vld [vmem:[%s5243_s5 + $0xe38] sm:$0xff] }
 0x315   : > { %2872 = vmatpush1.bf16.msra.mxu1 %v2871_v47  ;;  %2810 = vmatprep.subr.bf16.mxu0 %v2809_v48  ;;  %v2829_v47 = vpack.c.bf16 %v1560_v42, %v1558_v41  ;;  %v1557_v48 = vld [vmem:[%s5243_s5 + $0x900] sm:$0xff]  ;;  %v1580_v41 = vld [vmem:[%s5243_s5 + $0x9b8] sm:$0xff]  ;;  %v1713_v42 = vld [vmem:[%s5243_s5 + $0xba8] sm:$0xff] }
 0x316   : > { %2874 = vmatprep.subr.bf16.mxu1 %v2873_v39  ;;  %v1694_v39 = vld [vmem:[%s5243_s5 + $0xb10] sm:$0xff]  ;;  %v2831_v56 = vpack.c.bf16 %v1559_v49, %v1557_v48  ;;  %v1712_v49 = vld [vmem:[%s5243_s5 + $0xba0] sm:$0xff]  ;;  %v1935_v29 = vld [vmem:[%s5243_s5 + $0xe28] sm:$0xff] }
 0x317   : > { %v1579_v48 = vld [vmem:[%s5243_s5 + $0x9b0] sm:$0xff] }
 0x318   : > { %2812 = vmatpush1.bf16.msra.mxu0 %v2811_v57  ;;  %v2895_v57 = vpack.c.bf16 %v1694_v39, %v1692_v50  ;;  %v2913_v50 = vpack.c.bf16 %v1715_v43, %v1713_v42  ;;  %v1582_v39 = vld [vmem:[%s5243_s5 + $0x9c8] sm:$0xff]  ;;  %v1941_v42 = vld [vmem:[%s5243_s5 + $0xe58] sm:$0xff] }
 0x319   : > { %2876 = vmatpush1.bf16.msra.mxu1 %v2875_v58  ;;  %2814 = vmatprep.subr.bf16.mxu0 %v2813_v59  ;;  %v2833_v58 = vpack.c.bf16 %v1564_v53, %v1562_v52  ;;  %v1561_v59 = vld [vmem:[%s5243_s5 + $0x920] sm:$0xff]  ;;  %v1584_v52 = vld [vmem:[%s5243_s5 + $0x9d8] sm:$0xff]  ;;  %v1717_v53 = vld [vmem:[%s5243_s5 + $0xbc8] sm:$0xff] }
 0x31a   : > { %2878 = vmatprep.subr.bf16.mxu1 %v2877_v63  ;;  %v1698_v63 = vld [vmem:[%s5243_s5 + $0xb30] sm:$0xff]  ;;  %v2835_v5 = vpack.c.bf16 %v1563_v60, %v1561_v59  ;;  %v1716_v60 = vld [vmem:[%s5243_s5 + $0xbc0] sm:$0xff] }
 0x31b   : > { %v1583_v59 = vld [vmem:[%s5243_s5 + $0x9d0] sm:$0xff] }
 0x31c   : > { %2816 = vmatpush1.bf16.msra.mxu0 %v2815_v6  ;;  %v2899_v6 = vpack.c.bf16 %v1698_v63, %v1696_v61  ;;  %v2917_v61 = vpack.c.bf16 %v1719_v54, %v1717_v53  ;;  %v1586_v63 = vld [vmem:[%s5243_s5 + $0x9e8] sm:$0xff]  ;;  %v1945_v53 = vld [vmem:[%s5243_s5 + $0xe78] sm:$0xff] }
 0x31d   : > { %2880 = vmatpush1.bf16.msra.mxu1 %v2879_v7  ;;  %2818 = vmatprep.subr.bf16.mxu0 %v2817_v8  ;;  %v2837_v7 = vpack.c.bf16 %v1568_v2, %v1566_v1  ;;  %v1565_v8 = vld [vmem:[%s5243_s5 + $0x940] sm:$0xff]  ;;  %v1588_v1 = vld [vmem:[%s5243_s5 + $0x9f8] sm:$0xff]  ;;  %v1721_v2 = vld [vmem:[%s5243_s5 + $0xbe8] sm:$0xff] }
 0x31e   : > { %2882 = vmatprep.subr.bf16.mxu1 %v2881_v13  ;;  %v1702_v13 = vld [vmem:[%s5243_s5 + $0xb50] sm:$0xff]  ;;  %v2839_v19 = vpack.c.bf16 %v1567_v9, %v1565_v8  ;;  %v1720_v9 = vld [vmem:[%s5243_s5 + $0xbe0] sm:$0xff] }
 0x31f   : > { %v1587_v8 = vld [vmem:[%s5243_s5 + $0x9f0] sm:$0xff] }
 0x320   : > { %2820 = vmatpush1.bf16.msra.mxu0 %v2819_v20  ;;  %v2903_v20 = vpack.c.bf16 %v1702_v13, %v1700_v11  ;;  %v2921_v11 = vpack.c.bf16 %v1723_v3, %v1721_v2  ;;  %v1796_v13 = vld [vmem:[%s5243_s5 + $0xc08] sm:$0xff]  ;;  %v1949_v2 = vld [vmem:[%s5243_s5 + $0xe98] sm:$0xff] }
 0x321   : > { %2884 = vmatpush1.bf16.msra.mxu1 %v2883_v21  ;;  %2822 = vmatprep.subr.bf16.mxu0 %v2821_v22  ;;  %v2841_v21 = vpack.c.bf16 %v1572_v16, %v1570_v14  ;;  %v1569_v22 = vld [vmem:[%s5243_s5 + $0x960] sm:$0xff]  ;;  %v1798_v14 = vld [vmem:[%s5243_s5 + $0xc18] sm:$0xff]  ;;  %v1931_v16 = vld [vmem:[%s5243_s5 + $0xe08] sm:$0xff] }
 0x322   : > { %2886 = vmatprep.subr.bf16.mxu1 %v2885_v26  ;;  %v1706_v26 = vld [vmem:[%s5243_s5 + $0xb70] sm:$0xff]  ;;  %v2843_v31 = vpack.c.bf16 %v1571_v23, %v1569_v22  ;;  %v2989_v23 = vpack.c.bf16 %v1933_v17, %v1931_v16  ;;  %v1953_v16 = vld [vmem:[%s5243_s5 + $0xeb8] sm:$0xff] }
 0x323   : > { %v1797_v22 = vld [vmem:[%s5243_s5 + $0xc10] sm:$0xff] }
 0x324   : > { %2824 = vmatpush1.bf16.msra.mxu0 %v2823_v32  ;;  %v2907_v32 = vpack.c.bf16 %v1706_v26, %v1704_v24  ;;  %v1930_v24 = vld [vmem:[%s5243_s5 + $0xe00] sm:$0xff]  ;;  %v1800_v26 = vld [vmem:[%s5243_s5 + $0xc28] sm:$0xff] }
 0x325   : > { %2888 = vmatpush1.bf16.msra.mxu1 %v2887_v33  ;;  %2826 = vmatprep.subr.bf16.mxu0 %v2825_v34  ;;  %v2845_v33 = vpack.c.bf16 %v1576_v28, %v1574_v27  ;;  %v1573_v34 = vld [vmem:[%s5243_s5 + $0x980] sm:$0xff]  ;;  %v1802_v27 = vld [vmem:[%s5243_s5 + $0xc38] sm:$0xff] }
 0x326   : > { %2890 = vmatprep.subr.bf16.mxu1 %v2889_v38  ;;  %v1710_v38 = vld [vmem:[%s5243_s5 + $0xb90] sm:$0xff]  ;;  %v2847_v44 = vpack.c.bf16 %v1575_v35, %v1573_v34  ;;  %v1934_v34 = vld [vmem:[%s5243_s5 + $0xe20] sm:$0xff]  ;;  %v2929_v35 = vpack.c.bf16 %v1802_v27, %v1800_v26  ;;  %v1822_v26 = vld [vmem:[%s5243_s5 + $0xcd8] sm:$0xff] }
 0x327   : > { %v1955_v27 = vld [vmem:[%s5243_s5 + $0xec8] sm:$0xff] }
 0x328   : > { %2828 = vmatpush1.bf16.msra.mxu0 %v2827_v45  ;;  %v2911_v45 = vpack.c.bf16 %v1710_v38, %v1708_v36  ;;  %v1936_v36 = vld [vmem:[%s5243_s5 + $0xe30] sm:$0xff]  ;;  %v1806_v38 = vld [vmem:[%s5243_s5 + $0xc58] sm:$0xff] }
 0x329   : > { %2892 = vmatpush1.bf16.msra.mxu1 %v2891_v46  ;;  %2830 = vmatprep.subr.bf16.mxu0 %v2829_v47  ;;  %v2849_v46 = vpack.c.bf16 %v1580_v41, %v1578_v40  ;;  %v1577_v47 = vld [vmem:[%s5243_s5 + $0x9a0] sm:$0xff]  ;;  %v2993_v40 = vpack.c.bf16 %v1937_v30, %v1935_v29  ;;  %v1939_v41 = vld [vmem:[%s5243_s5 + $0xe48] sm:$0xff] }
 0x32a   : > { %2894 = vmatprep.subr.bf16.mxu1 %v2893_v51  ;;  %v1714_v51 = vld [vmem:[%s5243_s5 + $0xbb0] sm:$0xff]  ;;  %v2851_v55 = vpack.c.bf16 %v1579_v48, %v1577_v47  ;;  %v1938_v48 = vld [vmem:[%s5243_s5 + $0xe40] sm:$0xff] }
 0x32b   : > { %v1805_v47 = vld [vmem:[%s5243_s5 + $0xc50] sm:$0xff] }
 0x32c   : > { %2832 = vmatpush1.bf16.msra.mxu0 %v2831_v56  ;;  %v2915_v56 = vpack.c.bf16 %v1714_v51, %v1712_v49  ;;  %v2997_v49 = vpack.c.bf16 %v1941_v42, %v1939_v41  ;;  %v1808_v51 = vld [vmem:[%s5243_s5 + $0xc68] sm:$0xff]  ;;  %v1961_v41 = vld [vmem:[%s5243_s5 + $0xef8] sm:$0xff] }
 0x32d   : > { %2896 = vmatpush1.bf16.msra.mxu1 %v2895_v57  ;;  %2834 = vmatprep.subr.bf16.mxu0 %v2833_v58  ;;  %v2853_v57 = vpack.c.bf16 %v1584_v52, %v1582_v39  ;;  %v1581_v58 = vld [vmem:[%s5243_s5 + $0x9c0] sm:$0xff]  ;;  %v1810_v39 = vld [vmem:[%s5243_s5 + $0xc78] sm:$0xff]  ;;  %v1943_v52 = vld [vmem:[%s5243_s5 + $0xe68] sm:$0xff] }
 0x32e   : > { %2898 = vmatprep.subr.bf16.mxu1 %v2897_v62  ;;  %v1718_v62 = vld [vmem:[%s5243_s5 + $0xbd0] sm:$0xff]  ;;  %v2855_v4 = vpack.c.bf16 %v1583_v59, %v1581_v58  ;;  %v1942_v59 = vld [vmem:[%s5243_s5 + $0xe60] sm:$0xff] }
 0x32f   : > { %v1809_v58 = vld [vmem:[%s5243_s5 + $0xc70] sm:$0xff] }
 0x330   : > { %2836 = vmatpush1.bf16.msra.mxu0 %v2835_v5  ;;  %v2919_v5 = vpack.c.bf16 %v1718_v62, %v1716_v60  ;;  %v3001_v60 = vpack.c.bf16 %v1945_v53, %v1943_v52  ;;  %v1812_v62 = vld [vmem:[%s5243_s5 + $0xc88] sm:$0xff]  ;;  %v1965_v52 = vld [vmem:[%s5243_s5 + $0xf18] sm:$0xff] }
 0x331   : > { %2900 = vmatpush1.bf16.msra.mxu1 %v2899_v6  ;;  %2838 = vmatprep.subr.bf16.mxu0 %v2837_v7  ;;  %v2857_v6 = vpack.c.bf16 %v1588_v1, %v1586_v63  ;;  %v1585_v7 = vld [vmem:[%s5243_s5 + $0x9e0] sm:$0xff]  ;;  %v1814_v63 = vld [vmem:[%s5243_s5 + $0xc98] sm:$0xff]  ;;  %v1947_v1 = vld [vmem:[%s5243_s5 + $0xe88] sm:$0xff] }
 0x332   : > { %2902 = vmatprep.subr.bf16.mxu1 %v2901_v12  ;;  %v1722_v12 = vld [vmem:[%s5243_s5 + $0xbf0] sm:$0xff]  ;;  %v2859_v18 = vpack.c.bf16 %v1587_v8, %v1585_v7  ;;  %v1946_v8 = vld [vmem:[%s5243_s5 + $0xe80] sm:$0xff] }
 0x333   : > { %v1813_v7 = vld [vmem:[%s5243_s5 + $0xc90] sm:$0xff] }
 0x334   : > { %2840 = vmatpush1.bf16.msra.mxu0 %v2839_v19  ;;  %v2923_v19 = vpack.c.bf16 %v1722_v12, %v1720_v9  ;;  %v3005_v9 = vpack.c.bf16 %v1949_v2, %v1947_v1  ;;  %v1816_v12 = vld [vmem:[%s5243_s5 + $0xca8] sm:$0xff]  ;;  %v1969_v1 = vld [vmem:[%s5243_s5 + $0xf38] sm:$0xff] }
 0x335   : > { %2904 = vmatpush1.bf16.msra.mxu1 %v2903_v20  ;;  %2842 = vmatprep.subr.bf16.mxu0 %v2841_v21  ;;  %v2925_v20 = vpack.c.bf16 %v1798_v14, %v1796_v13  ;;  %v1795_v21 = vld [vmem:[%s5243_s5 + $0xc00] sm:$0xff]  ;;  %v1818_v13 = vld [vmem:[%s5243_s5 + $0xcb8] sm:$0xff]  ;;  %v1951_v14 = vld [vmem:[%s5243_s5 + $0xea8] sm:$0xff] }
 0x336   : > { %2906 = vmatprep.subr.bf16.mxu1 %v2905_v25  ;;  %v1932_v25 = vld [vmem:[%s5243_s5 + $0xe10] sm:$0xff]  ;;  %v2927_v28 = vpack.c.bf16 %v1797_v22, %v1795_v21  ;;  %v1950_v22 = vld [vmem:[%s5243_s5 + $0xea0] sm:$0xff] }
 0x337   : > { %v1817_v21 = vld [vmem:[%s5243_s5 + $0xcb0] sm:$0xff] }
 0x338   : > { %2844 = vmatpush1.bf16.msra.mxu0 %v2843_v31  ;;  %v2991_v31 = vpack.c.bf16 %v1932_v25, %v1930_v24  ;;  %v1952_v24 = vld [vmem:[%s5243_s5 + $0xeb0] sm:$0xff]  ;;  %v1820_v25 = vld [vmem:[%s5243_s5 + $0xcc8] sm:$0xff] }
 0x339   : > { %2908 = vmatpush1.bf16.msra.mxu1 %v2907_v32  ;;  %2846 = vmatprep.subr.bf16.mxu0 %v2845_v33  ;;  %v1799_v32 = vld [vmem:[%s5243_s5 + $0xc20] sm:$0xff]  ;;  %v1801_v33 = vld [vmem:[%s5243_s5 + $0xc30] sm:$0xff]  ;;  %v3011_v30 = vpack.c.bf16 %v1952_v24, %v1950_v22  ;;  %v1840_v24 = vld [vmem:[%s5243_s5 + $0xd68] sm:$0xff] }
 0x33a   : > { %2910 = vmatprep.subr.bf16.mxu1 %v2909_v37  ;;  %v1804_v37 = vld [vmem:[%s5243_s5 + $0xc48] sm:$0xff]  ;;  %v2931_v43 = vpack.c.bf16 %v1801_v33, %v1799_v32  ;;  %v1819_v32 = vld [vmem:[%s5243_s5 + $0xcc0] sm:$0xff]  ;;  %v1821_v33 = vld [vmem:[%s5243_s5 + $0xcd0] sm:$0xff] }
 0x33b   : > { %v2951_v42 = vpack.c.bf16 %v1821_v33, %v1819_v32  ;;  %v1841_v32 = vld [vmem:[%s5243_s5 + $0xd70] sm:$0xff]  ;;  %v1974_v33 = vld [vmem:[%s5243_s5 + $0xf60] sm:$0xff] }
 0x33c   : > { %2848 = vmatpush1.bf16.msra.mxu0 %v2847_v44  ;;  %v2995_v44 = vpack.c.bf16 %v1936_v36, %v1934_v34  ;;  %v1954_v34 = vld [vmem:[%s5243_s5 + $0xec0] sm:$0xff]  ;;  %v1956_v36 = vld [vmem:[%s5243_s5 + $0xed0] sm:$0xff] }
 0x33d   : > { %2912 = vmatpush1.bf16.msra.mxu1 %v2911_v45  ;;  %2850 = vmatprep.subr.bf16.mxu0 %v2849_v46  ;;  %v2933_v45 = vpack.c.bf16 %v1806_v38, %v1804_v37  ;;  %v1803_v46 = vld [vmem:[%s5243_s5 + $0xc40] sm:$0xff]  ;;  %v1824_v37 = vld [vmem:[%s5243_s5 + $0xce8] sm:$0xff]  ;;  %v1826_v38 = vld [vmem:[%s5243_s5 + $0xcf8] sm:$0xff] }
 0x33e   : > { %2914 = vmatprep.subr.bf16.mxu1 %v2913_v50  ;;  %v1940_v50 = vld [vmem:[%s5243_s5 + $0xe50] sm:$0xff]  ;;  %v2935_v54 = vpack.c.bf16 %v1805_v47, %v1803_v46  ;;  %v1958_v47 = vld [vmem:[%s5243_s5 + $0xee0] sm:$0xff] }
 0x33f   : > { %v1825_v46 = vld [vmem:[%s5243_s5 + $0xcf0] sm:$0xff] }
 0x340   : > { %2852 = vmatpush1.bf16.msra.mxu0 %v2851_v55  ;;  %v2999_v55 = vpack.c.bf16 %v1940_v50, %v1938_v48  ;;  %v1828_v50 = vld [vmem:[%s5243_s5 + $0xd08] sm:$0xff] }
 0x341   : > { %2916 = vmatpush1.bf16.msra.mxu1 %v2915_v56  ;;  %2854 = vmatprep.subr.bf16.mxu0 %v2853_v57  ;;  %v2937_v56 = vpack.c.bf16 %v1810_v39, %v1808_v51  ;;  %v1807_v57 = vld [vmem:[%s5243_s5 + $0xc60] sm:$0xff]  ;;  %v1830_v51 = vld [vmem:[%s5243_s5 + $0xd18] sm:$0xff]  ;;  %v1963_v39 = vld [vmem:[%s5243_s5 + $0xf08] sm:$0xff] }
 0x342   : > { %2918 = vmatprep.subr.bf16.mxu1 %v2917_v61  ;;  %v1944_v61 = vld [vmem:[%s5243_s5 + $0xe70] sm:$0xff]  ;;  %v2939_v3 = vpack.c.bf16 %v1809_v58, %v1807_v57  ;;  %v1962_v58 = vld [vmem:[%s5243_s5 + $0xf00] sm:$0xff] }
 0x343   : > { %v1829_v57 = vld [vmem:[%s5243_s5 + $0xd10] sm:$0xff] }
 0x344   : > { %2856 = vmatpush1.bf16.msra.mxu0 %v2855_v4  ;;  %v3003_v4 = vpack.c.bf16 %v1944_v61, %v1942_v59  ;;  %v3021_v59 = vpack.c.bf16 %v1965_v52, %v1963_v39  ;;  %v1832_v61 = vld [vmem:[%s5243_s5 + $0xd28] sm:$0xff]  ;;  %v1985_v39 = vld [vmem:[%s5243_s5 + $0xfb8] sm:$0xff] }
 0x345   : > { %2920 = vmatpush1.bf16.msra.mxu1 %v2919_v5  ;;  %2858 = vmatprep.subr.bf16.mxu0 %v2857_v6  ;;  %v2941_v5 = vpack.c.bf16 %v1814_v63, %v1812_v62  ;;  %v1811_v6 = vld [vmem:[%s5243_s5 + $0xc80] sm:$0xff]  ;;  %v1834_v62 = vld [vmem:[%s5243_s5 + $0xd38] sm:$0xff]  ;;  %v1967_v63 = vld [vmem:[%s5243_s5 + $0xf28] sm:$0xff] }
 0x346   : > { %2922 = vmatprep.subr.bf16.mxu1 %v2921_v11  ;;  %v1948_v11 = vld [vmem:[%s5243_s5 + $0xe90] sm:$0xff]  ;;  %v2943_v17 = vpack.c.bf16 %v1813_v7, %v1811_v6  ;;  %v1966_v7 = vld [vmem:[%s5243_s5 + $0xf20] sm:$0xff] }
 0x347   : > { %v1833_v6 = vld [vmem:[%s5243_s5 + $0xd30] sm:$0xff] }
 0x348   : > { %2860 = vmatpush1.bf16.msra.mxu0 %v2859_v18  ;;  %v3007_v18 = vpack.c.bf16 %v1948_v11, %v1946_v8  ;;  %v3025_v8 = vpack.c.bf16 %v1969_v1, %v1967_v63  ;;  %v1836_v11 = vld [vmem:[%s5243_s5 + $0xd48] sm:$0xff]  ;;  %v1989_v63 = vld [vmem:[%s5243_s5 + $0xfd8] sm:$0xff] }
 0x349   : > { %2924 = vmatpush1.bf16.msra.mxu1 %v2923_v19  ;;  %2926 = vmatprep.subr.bf16.mxu0 %v2925_v20  ;;  %v2945_v19 = vpack.c.bf16 %v1818_v13, %v1816_v12  ;;  %v1815_v20 = vld [vmem:[%s5243_s5 + $0xca0] sm:$0xff]  ;;  %v1838_v12 = vld [vmem:[%s5243_s5 + $0xd58] sm:$0xff]  ;;  %v1971_v13 = vld [vmem:[%s5243_s5 + $0xf48] sm:$0xff] }
 0x34a   : > { %2990 = vmatprep.subr.bf16.mxu1 %v2989_v23  ;;  %v3009_v23 = vpack.c.bf16 %v1953_v16, %v1951_v14  ;;  %v2947_v29 = vpack.c.bf16 %v1817_v21, %v1815_v20  ;;  %v1973_v14 = vld [vmem:[%s5243_s5 + $0xf58] sm:$0xff]  ;;  %v1837_v20 = vld [vmem:[%s5243_s5 + $0xd50] sm:$0xff]  ;;  %v1970_v21 = vld [vmem:[%s5243_s5 + $0xf40] sm:$0xff] }
 0x34b   : > { %1654 = vmatmul.mubr.f32.vlgmr.msra.gmra.mrb[8].mxu0 %v3895_v15  ;;  %v3029_v22 = vpack.c.bf16 %v1973_v14, %v1971_v13  ;;  %v1993_v13 = vld [vmem:[%s5243_s5 + $0xff8] sm:$0xff] }
 0x34c   : > { %1789 = vmatmul.mubr.f32.vlgmr.msra.gmra.mrb[6].mxu1 %v3895_v15  ;;  %2928 = vmatpush1.bf16.msra.mxu0 %v2927_v28  ;;  %v1957_v28 = vld [vmem:[%s5243_s5 + $0xed8] sm:$0xff] }
 0x34d   : > { %1923 = vmatprep.mubr.f32.mxu0 %v3887_v10  ;;  %2992 = vmatpush1.bf16.msra.mxu1 %v2991_v31  ;;  %v2949_v31 = vpack.c.bf16 %v1822_v26, %v1820_v25  ;;  %v1842_v25 = vld [vmem:[%s5243_s5 + $0xd78] sm:$0xff]  ;;  %v1975_v26 = vld [vmem:[%s5243_s5 + $0xf68] sm:$0xff] }
 0x34e   : > { %2058 = vmatprep.mubr.f32.mxu1 %v3887_v10  ;;  %2930 = vmatprep.subr.bf16.mxu0 %v2929_v35  ;;  %v3013_v35 = vpack.c.bf16 %v1957_v28, %v1955_v27  ;;  %v1977_v27 = vld [vmem:[%s5243_s5 + $0xf78] sm:$0xff] }
 0x34f   : > { %2994 = vmatprep.subr.bf16.mxu1 %v2993_v40  ;;  %v1959_v40 = vld [vmem:[%s5243_s5 + $0xee8] sm:$0xff] }
 0x350   : > { %2932 = vmatpush1.bf16.msra.mxu0 %v2931_v43  ;;  %v3015_v43 = vpack.c.bf16 %v1956_v36, %v1954_v34  ;;  %v3017_v48 = vpack.c.bf16 %v1961_v41, %v1959_v40  ;;  %v3033_v34 = vpack.c.bf16 %v1977_v27, %v1975_v26  ;;  %v1844_v36 = vld [vmem:[%s5243_s5 + $0xd88] sm:$0xff]  ;;  %v1981_v40 = vld [vmem:[%s5243_s5 + $0xf98] sm:$0xff] }
 0x351   : > { %2996 = vmatpush1.bf16.msra.mxu1 %v2995_v44  ;;  %2934 = vmatprep.subr.bf16.mxu0 %v2933_v45  ;;  %v2953_v44 = vpack.c.bf16 %v1826_v38, %v1824_v37  ;;  %v1823_v45 = vld [vmem:[%s5243_s5 + $0xce0] sm:$0xff]  ;;  %v1846_v37 = vld [vmem:[%s5243_s5 + $0xd98] sm:$0xff]  ;;  %v1979_v38 = vld [vmem:[%s5243_s5 + $0xf88] sm:$0xff] }
 0x352   : > { %2998 = vmatprep.subr.bf16.mxu1 %v2997_v49  ;;  %v1960_v49 = vld [vmem:[%s5243_s5 + $0xef0] sm:$0xff]  ;;  %v2955_v53 = vpack.c.bf16 %v1825_v46, %v1823_v45  ;;  %v1978_v46 = vld [vmem:[%s5243_s5 + $0xf80] sm:$0xff] }
 0x353   : > { %v1845_v45 = vld [vmem:[%s5243_s5 + $0xd90] sm:$0xff] }
 0x354   : > { %2936 = vmatpush1.bf16.msra.mxu0 %v2935_v54  ;;  %v3019_v54 = vpack.c.bf16 %v1960_v49, %v1958_v47  ;;  %v3037_v47 = vpack.c.bf16 %v1981_v40, %v1979_v38  ;;  %v1848_v49 = vld [vmem:[%s5243_s5 + $0xda8] sm:$0xff] }
 0x355   : > { %3000 = vmatpush1.bf16.msra.mxu1 %v2999_v55  ;;  %2938 = vmatprep.subr.bf16.mxu0 %v2937_v56  ;;  %v2957_v55 = vpack.c.bf16 %v1830_v51, %v1828_v50  ;;  %v1827_v56 = vld [vmem:[%s5243_s5 + $0xd00] sm:$0xff]  ;;  %v1850_v50 = vld [vmem:[%s5243_s5 + $0xdb8] sm:$0xff]  ;;  %v1983_v51 = vld [vmem:[%s5243_s5 + $0xfa8] sm:$0xff] }
 0x356   : > { %3002 = vmatprep.subr.bf16.mxu1 %v3001_v60  ;;  %v1964_v60 = vld [vmem:[%s5243_s5 + $0xf10] sm:$0xff]  ;;  %v2959_v2 = vpack.c.bf16 %v1829_v57, %v1827_v56  ;;  %v1982_v57 = vld [vmem:[%s5243_s5 + $0xfa0] sm:$0xff] }
 0x357   : > { %v1849_v56 = vld [vmem:[%s5243_s5 + $0xdb0] sm:$0xff] }
 0x358   : > { %2940 = vmatpush1.bf16.msra.mxu0 %v2939_v3  ;;  %v3023_v3 = vpack.c.bf16 %v1964_v60, %v1962_v58  ;;  %v3041_v58 = vpack.c.bf16 %v1985_v39, %v1983_v51  ;;  %v1852_v60 = vld [vmem:[%s5243_s5 + $0xdc8] sm:$0xff]  ;;  %v2081_v39 = vld [vmem:[%s5243_s5 + $0x1080] sm:$0xff] }
 0x359   : > { %3004 = vmatpush1.bf16.msra.mxu1 %v3003_v4  ;;  %2942 = vmatprep.subr.bf16.mxu0 %v2941_v5  ;;  %v2961_v4 = vpack.c.bf16 %v1834_v62, %v1832_v61  ;;  %v1831_v5 = vld [vmem:[%s5243_s5 + $0xd20] sm:$0xff]  ;;  %v1854_v61 = vld [vmem:[%s5243_s5 + $0xdd8] sm:$0xff]  ;;  %v1987_v62 = vld [vmem:[%s5243_s5 + $0xfc8] sm:$0xff] }
 0x35a   : > { %3006 = vmatprep.subr.bf16.mxu1 %v3005_v9  ;;  %v1968_v9 = vld [vmem:[%s5243_s5 + $0xf30] sm:$0xff]  ;;  %v2963_v16 = vpack.c.bf16 %v1833_v6, %v1831_v5  ;;  %v1986_v6 = vld [vmem:[%s5243_s5 + $0xfc0] sm:$0xff] }
 0x35b   : > { %v1853_v5 = vld [vmem:[%s5243_s5 + $0xdd0] sm:$0xff] }
 0x35c   : > { %2944 = vmatpush1.bf16.msra.mxu0 %v2943_v17  ;;  %v3027_v17 = vpack.c.bf16 %v1968_v9, %v1966_v7  ;;  %v3045_v7 = vpack.c.bf16 %v1989_v63, %v1987_v62  ;;  %v1856_v9 = vld [vmem:[%s5243_s5 + $0xde8] sm:$0xff]  ;;  %v2089_v63 = vld [vmem:[%s5243_s5 + $0x10c0] sm:$0xff] }
 0x35d   : > { %3008 = vmatpush1.bf16.msra.mxu1 %v3007_v18  ;;  %2946 = vmatprep.subr.bf16.mxu0 %v2945_v19  ;;  %v2965_v18 = vpack.c.bf16 %v1838_v12, %v1836_v11  ;;  %v1835_v19 = vld [vmem:[%s5243_s5 + $0xd40] sm:$0xff]  ;;  %v1858_v11 = vld [vmem:[%s5243_s5 + $0xdf8] sm:$0xff]  ;;  %v1991_v12 = vld [vmem:[%s5243_s5 + $0xfe8] sm:$0xff] }
 0x35e   : > { %3010 = vmatprep.subr.bf16.mxu1 %v3009_v23  ;;  %v1972_v23 = vld [vmem:[%s5243_s5 + $0xf50] sm:$0xff]  ;;  %v2967_v28 = vpack.c.bf16 %v1837_v20, %v1835_v19  ;;  %v1990_v20 = vld [vmem:[%s5243_s5 + $0xfe0] sm:$0xff] }
 0x35f   : > { %v1857_v19 = vld [vmem:[%s5243_s5 + $0xdf0] sm:$0xff] }
 0x360   : > { %2948 = vmatpush1.bf16.msra.mxu0 %v2947_v29  ;;  %v3031_v29 = vpack.c.bf16 %v1972_v23, %v1970_v21  ;;  %v3049_v21 = vpack.c.bf16 %v1993_v13, %v1991_v12  ;;  %v2066_v23 = vld [vmem:[%s5243_s5 + $0x1008] sm:$0xff]  ;;  %v2093_v13 = vld [vmem:[%s5243_s5 + $0x10e0] sm:$0xff] }
 0x361   : > { %3012 = vmatpush1.bf16.msra.mxu1 %v3011_v30  ;;  %2950 = vmatprep.subr.bf16.mxu0 %v2949_v31  ;;  %v2969_v30 = vpack.c.bf16 %v1842_v25, %v1840_v24  ;;  %v1839_v31 = vld [vmem:[%s5243_s5 + $0xd60] sm:$0xff]  ;;  %v2068_v24 = vld [vmem:[%s5243_s5 + $0x1018] sm:$0xff] }
 0x362   : > { %3014 = vmatprep.subr.bf16.mxu1 %v3013_v35  ;;  %v1976_v35 = vld [vmem:[%s5243_s5 + $0xf70] sm:$0xff]  ;;  %v2971_v41 = vpack.c.bf16 %v1841_v32, %v1839_v31  ;;  %v3053_v27 = vpack.c.bf16 %v2068_v24, %v2066_v23  ;;  %v2072_v31 = vld [vmem:[%s5243_s5 + $0x1038] sm:$0xff] }
 0x363   : > { %v2104_v23 = vld [vmem:[%s5243_s5 + $0x1138] sm:$0xff] }
 0x364   : > { %2952 = vmatpush1.bf16.msra.mxu0 %v2951_v42  ;;  %v3035_v42 = vpack.c.bf16 %v1976_v35, %v1974_v33  ;;  %v2071_v35 = vld [vmem:[%s5243_s5 + $0x1030] sm:$0xff] }
 0x365   : > { %3016 = vmatpush1.bf16.msra.mxu1 %v3015_v43  ;;  %2954 = vmatprep.subr.bf16.mxu0 %v2953_v44  ;;  %v2973_v43 = vpack.c.bf16 %v1846_v37, %v1844_v36  ;;  %v1843_v44 = vld [vmem:[%s5243_s5 + $0xd80] sm:$0xff]  ;;  %v2074_v36 = vld [vmem:[%s5243_s5 + $0x1048] sm:$0xff]  ;;  %v2076_v37 = vld [vmem:[%s5243_s5 + $0x1058] sm:$0xff] }
 0x366   : > { %3018 = vmatprep.subr.bf16.mxu1 %v3017_v48  ;;  %v1980_v48 = vld [vmem:[%s5243_s5 + $0xf90] sm:$0xff]  ;;  %v2975_v52 = vpack.c.bf16 %v1845_v45, %v1843_v44  ;;  %v3061_v40 = vpack.c.bf16 %v2076_v37, %v2074_v36  ;;  %v2080_v44 = vld [vmem:[%s5243_s5 + $0x1078] sm:$0xff] }
 0x368   : > { %2956 = vmatpush1.bf16.msra.mxu0 %v2955_v53  ;;  %v3039_v53 = vpack.c.bf16 %v1980_v48, %v1978_v46  ;;  %v2077_v46 = vld [vmem:[%s5243_s5 + $0x1060] sm:$0xff]  ;;  %v2082_v48 = vld [vmem:[%s5243_s5 + $0x1088] sm:$0xff] }
 0x369   : > { %3020 = vmatpush1.bf16.msra.mxu1 %v3019_v54  ;;  %2958 = vmatprep.subr.bf16.mxu0 %v2957_v55  ;;  %v2977_v54 = vpack.c.bf16 %v1850_v50, %v1848_v49  ;;  %v1847_v55 = vld [vmem:[%s5243_s5 + $0xda0] sm:$0xff]  ;;  %v2084_v49 = vld [vmem:[%s5243_s5 + $0x1098] sm:$0xff] }
 0x36a   : > { %3022 = vmatprep.subr.bf16.mxu1 %v3021_v59  ;;  %v1984_v59 = vld [vmem:[%s5243_s5 + $0xfb0] sm:$0xff]  ;;  %v2979_v1 = vpack.c.bf16 %v1849_v56, %v1847_v55  ;;  %v3069_v51 = vpack.c.bf16 %v2084_v49, %v2082_v48 }
 0x36c   : > { %2960 = vmatpush1.bf16.msra.mxu0 %v2959_v2  ;;  %v3043_v2 = vpack.c.bf16 %v1984_v59, %v1982_v57  ;;  %v2085_v57 = vld [vmem:[%s5243_s5 + $0x10a0] sm:$0xff]  ;;  %v2090_v59 = vld [vmem:[%s5243_s5 + $0x10c8] sm:$0xff] }
 0x36d   : > { %3024 = vmatpush1.bf16.msra.mxu1 %v3023_v3  ;;  %2962 = vmatprep.subr.bf16.mxu0 %v2961_v4  ;;  %v2981_v3 = vpack.c.bf16 %v1854_v61, %v1852_v60  ;;  %v1851_v4 = vld [vmem:[%s5243_s5 + $0xdc0] sm:$0xff]  ;;  %v2092_v60 = vld [vmem:[%s5243_s5 + $0x10d8] sm:$0xff] }
 0x36e   : > { %3026 = vmatprep.subr.bf16.mxu1 %v3025_v8  ;;  %v1988_v8 = vld [vmem:[%s5243_s5 + $0xfd0] sm:$0xff]  ;;  %v2983_v14 = vpack.c.bf16 %v1853_v5, %v1851_v4  ;;  %v3077_v62 = vpack.c.bf16 %v2092_v60, %v2090_v59  ;;  %v2094_v4 = vld [vmem:[%s5243_s5 + $0x10e8] sm:$0xff]  ;;  %v2096_v5 = vld [vmem:[%s5243_s5 + $0x10f8] sm:$0xff] }
 0x36f   : > { %v3081_v12 = vpack.c.bf16 %v2096_v5, %v2094_v4 }
 0x370   : > { %2964 = vmatpush1.bf16.msra.mxu0 %v2963_v16  ;;  %v3047_v16 = vpack.c.bf16 %v1988_v8, %v1986_v6 }
 0x371   : > { %3028 = vmatpush1.bf16.msra.mxu1 %v3027_v17  ;;  %2966 = vmatprep.subr.bf16.mxu0 %v2965_v18  ;;  %v2985_v17 = vpack.c.bf16 %v1858_v11, %v1856_v9  ;;  %v1855_v18 = vld [vmem:[%s5243_s5 + $0xde0] sm:$0xff] }
 0x372   : > { %3030 = vmatprep.subr.bf16.mxu1 %v3029_v22  ;;  %v1992_v22 = vld [vmem:[%s5243_s5 + $0xff0] sm:$0xff]  ;;  %v2987_v25 = vpack.c.bf16 %v1857_v19, %v1855_v18 }
 0x373   : > { %v3051_v26 = vpack.c.bf16 %v1992_v22, %v1990_v20  ;;  %v2097_v20 = vld [vmem:[%s5243_s5 + $0x1100] sm:$0xff]  ;;  %v2102_v22 = vld [vmem:[%s5243_s5 + $0x1128] sm:$0xff] }
 0x374   : > { %2968 = vmatpush1.bf16.msra.mxu0 %v2967_v28  ;;  %v2065_v28 = vld [vmem:[%s5243_s5 + $0x1000] sm:$0xff] }
 0x375   : > { %3032 = vmatpush1.bf16.msra.mxu1 %v3031_v29  ;;  %2970 = vmatprep.subr.bf16.mxu0 %v2969_v30  ;;  %v2067_v29 = vld [vmem:[%s5243_s5 + $0x1010] sm:$0xff]  ;;  %v2070_v30 = vld [vmem:[%s5243_s5 + $0x1028] sm:$0xff] }
 0x376   : > { %3034 = vmatprep.subr.bf16.mxu1 %v3033_v34  ;;  %v3055_v32 = vpack.c.bf16 %v2067_v29, %v2065_v28  ;;  %v3057_v33 = vpack.c.bf16 %v2072_v31, %v2070_v30  ;;  %v2069_v34 = vld [vmem:[%s5243_s5 + $0x1020] sm:$0xff]  ;;  %v2106_v28 = vld [vmem:[%s5243_s5 + $0x1148] sm:$0xff]  ;;  %v2108_v29 = vld [vmem:[%s5243_s5 + $0x1158] sm:$0xff] }
 0x377   : > { %v3059_v38 = vpack.c.bf16 %v2071_v35, %v2069_v34  ;;  %v3093_v31 = vpack.c.bf16 %v2108_v29, %v2106_v28  ;;  %v2110_v34 = vld [vmem:[%s5243_s5 + $0x1168] sm:$0xff]  ;;  %v2112_v35 = vld [vmem:[%s5243_s5 + $0x1178] sm:$0xff]  ;;  %v2282_v29 = vld [vmem:[%s5248_s10] sm:$0x3] }
 0x378   : > { %2972 = vmatpush1.bf16.msra.mxu0 %v2971_v41  ;;  %v2073_v41 = vld [vmem:[%s5243_s5 + $0x1040] sm:$0xff]  ;;  %v3097_v37 = vpack.c.bf16 %v2112_v35, %v2110_v34 }
 0x379   : > { %3036 = vmatpush1.bf16.msra.mxu1 %v3035_v42  ;;  %2974 = vmatprep.subr.bf16.mxu0 %v2973_v43  ;;  %v2075_v42 = vld [vmem:[%s5243_s5 + $0x1050] sm:$0xff]  ;;  %v2078_v43 = vld [vmem:[%s5243_s5 + $0x1068] sm:$0xff] }
 0x37a   : > { %3038 = vmatprep.subr.bf16.mxu1 %v3037_v47  ;;  %v3065_v45 = vpack.c.bf16 %v2080_v44, %v2078_v43  ;;  %v2079_v47 = vld [vmem:[%s5243_s5 + $0x1070] sm:$0xff] }
 0x37b   : > { %v3067_v50 = vpack.c.bf16 %v2079_v47, %v2077_v46  ;;  %v2118_v46 = vld [vmem:[%s5243_s5 + $0x11a8] sm:$0xff]  ;;  %v2120_v47 = vld [vmem:[%s5243_s5 + $0x11b8] sm:$0xff] }
 0x37c   : > { %2976 = vmatpush1.bf16.msra.mxu0 %v2975_v52  ;;  %v2083_v52 = vld [vmem:[%s5243_s5 + $0x1090] sm:$0xff]  ;;  %v3105_v49 = vpack.c.bf16 %v2120_v47, %v2118_v46 }
 0x37d   : > { %3040 = vmatpush1.bf16.msra.mxu1 %v3039_v53  ;;  %2978 = vmatprep.subr.bf16.mxu0 %v2977_v54  ;;  %v2086_v53 = vld [vmem:[%s5243_s5 + $0x10a8] sm:$0xff]  ;;  %v2088_v54 = vld [vmem:[%s5243_s5 + $0x10b8] sm:$0xff]  ;;  %v3071_v55 = vpack.c.bf16 %v2083_v52, %v2081_v39 }
 0x37e   : > { %3042 = vmatprep.subr.bf16.mxu1 %v3041_v58  ;;  %v3073_v56 = vpack.c.bf16 %v2088_v54, %v2086_v53  ;;  %v2087_v58 = vld [vmem:[%s5243_s5 + $0x10b0] sm:$0xff]  ;;  %v2122_v39 = vld [vmem:[%s5243_s5 + $0x11c8] sm:$0xff]  ;;  %v2124_v52 = vld [vmem:[%s5243_s5 + $0x11d8] sm:$0xff] }
 0x37f   : > { %v3075_v61 = vpack.c.bf16 %v2087_v58, %v2085_v57  ;;  %v3109_v54 = vpack.c.bf16 %v2124_v52, %v2122_v39  ;;  %v2126_v57 = vld [vmem:[%s5243_s5 + $0x11e8] sm:$0xff]  ;;  %v2128_v58 = vld [vmem:[%s5243_s5 + $0x11f8] sm:$0xff] }
 0x380   : > { %2980 = vmatpush1.bf16.msra.mxu0 %v2979_v1  ;;  %v2091_v1 = vld [vmem:[%s5243_s5 + $0x10d0] sm:$0xff]  ;;  %v3113_v60 = vpack.c.bf16 %v2128_v58, %v2126_v57 }
 0x381   : > { %3044 = vmatpush1.bf16.msra.mxu1 %v3043_v2  ;;  %2982 = vmatprep.subr.bf16.mxu0 %v2981_v3  ;;  %v3079_v11 = vpack.c.bf16 %v2091_v1, %v2089_v63 }
 0x382   : > { %3046 = vmatprep.subr.bf16.mxu1 %v3045_v7 }
 0x384   : > { %2984 = vmatpush1.bf16.msra.mxu0 %v2983_v14  ;;  %v2095_v14 = vld [vmem:[%s5243_s5 + $0x10f0] sm:$0xff] }
 0x385   : > { %3048 = vmatpush1.bf16.msra.mxu1 %v3047_v16  ;;  %2986 = vmatprep.subr.bf16.mxu0 %v2985_v17  ;;  %v2098_v16 = vld [vmem:[%s5243_s5 + $0x1108] sm:$0xff]  ;;  %v2100_v17 = vld [vmem:[%s5243_s5 + $0x1118] sm:$0xff]  ;;  %v3083_v18 = vpack.c.bf16 %v2095_v14, %v2093_v13 }
 0x386   : > { %3050 = vmatprep.subr.bf16.mxu1 %v3049_v21  ;;  %v3085_v19 = vpack.c.bf16 %v2100_v17, %v2098_v16  ;;  %v2099_v21 = vld [vmem:[%s5243_s5 + $0x1110] sm:$0xff] }
 0x387   : > { %v3087_v24 = vpack.c.bf16 %v2099_v21, %v2097_v20 }
 0x388   : > { %2988 = vmatpush1.bf16.msra.mxu0 %v2987_v25  ;;  %v3089_v25 = vpack.c.bf16 %v2104_v23, %v2102_v22  ;;  %v2200_v23 = vld [vmem:[%s5246_s8] sm:$0xff] }
 0x389   : > { %3052 = vmatpush1.bf16.msra.mxu1 %v3051_v26  ;;  %3054 = vmatprep.subr.bf16.mxu0 %v3053_v27  ;;  %v2101_v26 = vld [vmem:[%s5243_s5 + $0x1120] sm:$0xff]  ;;  %v2103_v27 = vld [vmem:[%s5243_s5 + $0x1130] sm:$0xff] }
 0x38a   : > { %v3091_v30 = vpack.c.bf16 %v2103_v27, %v2101_v26 }
 0x38b   : > { %1924 = vmatmul.mubr.f32.vlgmr.msra.gmra.mrb[10].mxu0 %v3895_v15 }
 0x38c   : > { %2059 = vmatmul.mubr.f32.vlgmr.msra.gmra.mrb[8].mxu1 %v3895_v15  ;;  %3056 = vmatpush1.bf16.msra.mxu0 %v3055_v32  ;;  %v2105_v32 = vld [vmem:[%s5243_s5 + $0x1140] sm:$0xff] }
 0x38d   : > { %2193 = vmatprep.mubr.f32.mxu0 %v3887_v10  ;;  %3058 = vmatprep.subr.bf16.mxu0 %v3057_v33  ;;  %v3063_v10 = vpack.c.bf16 %v2075_v42, %v2073_v41  ;;  %v2107_v33 = vld [vmem:[%s5243_s5 + $0x1150] sm:$0xff]  ;;  %v2114_v41 = vld [vmem:[%s5243_s5 + $0x1188] sm:$0xff]  ;;  %v2116_v42 = vld [vmem:[%s5243_s5 + $0x1198] sm:$0xff] }
 0x38e   : > { %2275 = vmatprep.mubr.f32.mxu1 %v3160_v0  ;;  %v3095_v36 = vpack.c.bf16 %v2107_v33, %v2105_v32  ;;  %v3101_v44 = vpack.c.bf16 %v2116_v42, %v2114_v41 }
 0x390   : > { %3060 = vmatpush1.bf16.msra.mxu0 %v3059_v38  ;;  %v2109_v38 = vld [vmem:[%s5243_s5 + $0x1160] sm:$0xff] }
 0x391   : > { %3062 = vmatprep.subr.bf16.mxu0 %v3061_v40  ;;  %v2111_v40 = vld [vmem:[%s5243_s5 + $0x1170] sm:$0xff] }
 0x392   : > { %v3099_v43 = vpack.c.bf16 %v2111_v40, %v2109_v38 }
 0x394   : > { %3064 = vmatpush1.bf16.msra.mxu0 %v3063_v10  ;;  %v2113_v10 = vld [vmem:[%s5243_s5 + $0x1180] sm:$0xff] }
 0x395   : > { %3066 = vmatprep.subr.bf16.mxu0 %v3065_v45  ;;  %v2115_v45 = vld [vmem:[%s5243_s5 + $0x1190] sm:$0xff] }
 0x396   : > { %v3103_v48 = vpack.c.bf16 %v2115_v45, %v2113_v10 }
 0x398   : > { %3068 = vmatpush1.bf16.msra.mxu0 %v3067_v50  ;;  %v2117_v50 = vld [vmem:[%s5243_s5 + $0x11a0] sm:$0xff] }
 0x399   : > { %3070 = vmatprep.subr.bf16.mxu0 %v3069_v51  ;;  %v2119_v51 = vld [vmem:[%s5243_s5 + $0x11b0] sm:$0xff] }
 0x39a   : > { %v3107_v53 = vpack.c.bf16 %v2119_v51, %v2117_v50 }
 0x39c   : > { %3072 = vmatpush1.bf16.msra.mxu0 %v3071_v55  ;;  %v2121_v55 = vld [vmem:[%s5243_s5 + $0x11c0] sm:$0xff] }
 0x39d   : > { %3074 = vmatprep.subr.bf16.mxu0 %v3073_v56  ;;  %v2123_v56 = vld [vmem:[%s5243_s5 + $0x11d0] sm:$0xff] }
 0x39e   : > { %v1115_v2 = vpop.f32.mrb[4].mxu0  ;;  %v1250_v3 = vpop.f32.mrb[2].mxu1  ;;  %v3111_v59 = vpack.c.bf16 %v2123_v56, %v2121_v55 }
 0x39f   : > { %v3119_v6 = vpack.c.bf16 %v1250_v3, %v1115_v2  ;;  %v1117_v7 = vpop.f32.mrb[5].mxu0  ;;  %v1252_v8 = vpop.f32.mrb[3].mxu1 }
 0x3a0   : > { %v3117_v9 = vpack.c.bf16 %v1252_v8, %v1117_v7  ;;  %3076 = vmatpush1.bf16.msra.mxu0 %v3075_v61  ;;  %v2125_v61 = vld [vmem:[%s5243_s5 + $0x11e0] sm:$0xff] }
 0x3a1   : > { %3078 = vmatprep.subr.bf16.mxu0 %v3077_v62  ;;  %v2127_v62 = vld [vmem:[%s5243_s5 + $0x11f0] sm:$0xff] }
 0x3a2   : > { %3118 = vmatprep.subr.bf16.mxu1 %v3117_v9  ;;  %v3115_v63 = vpack.c.bf16 %v2127_v62, %v2125_v61 }
 0x3a3   : > { %3120 = vmatpush1.bf16.msra.mxu1 %v3119_v6 }
 0x3a4   : > { %3080 = vmatpush1.bf16.msra.mxu0 %v3079_v11 }
 0x3a5   : > { %3082 = vmatprep.subr.bf16.mxu0 %v3081_v12 }
 0x3a8   : > { %3084 = vmatpush1.bf16.msra.mxu0 %v3083_v18 }
 0x3a9   : > { %3086 = vmatprep.subr.bf16.mxu0 %v3085_v19 }
 0x3ac   : > { %3088 = vmatpush1.bf16.msra.mxu0 %v3087_v24 }
 0x3ad   : > { %3090 = vmatprep.subr.bf16.mxu0 %v3089_v25 }
 0x3b0   : > { %3092 = vmatpush1.bf16.msra.mxu0 %v3091_v30 }
 0x3b1   : > { %3094 = vmatprep.subr.bf16.mxu0 %v3093_v31 }
 0x3b4   : > { %3096 = vmatpush1.bf16.msra.mxu0 %v3095_v36 }
 0x3b5   : > { %3098 = vmatprep.subr.bf16.mxu0 %v3097_v37 }
 0x3b8   : > { %3100 = vmatpush1.bf16.msra.mxu0 %v3099_v43 }
 0x3b9   : > { %3102 = vmatprep.subr.bf16.mxu0 %v3101_v44 }
 0x3bc   : > { %3104 = vmatpush1.bf16.msra.mxu0 %v3103_v48 }
 0x3bd   : > { %3106 = vmatprep.subr.bf16.mxu0 %v3105_v49 }
 0x3c0   : > { %3108 = vmatpush1.bf16.msra.mxu0 %v3107_v53 }
 0x3c1   : > { %3110 = vmatprep.subr.bf16.mxu0 %v3109_v54 }
 0x3c4   : > { %3112 = vmatpush1.bf16.msra.mxu0 %v3111_v59 }
 0x3c5   : > { %3114 = vmatprep.subr.bf16.mxu0 %v3113_v60 }
 0x3c8   : > { %3116 = vmatpush1.bf16.msra.mxu0 %v3115_v63 }
 0x3cb   : > { %2194 = vmatmul.mubr.f32.vlgmr.msra.gmra.mrb[12].mxu0 %v3895_v15  ;;  %v2201_v15 = vld [vmem:[%s5247_s9] sm:$0xff] }
 0x3cc   : > { %2357 = vmatprep.mubr.f32.mxu0 %v3160_v0  ;;  %2204 = vperm.xlu1 %3151, %v2201_v15   ;;  %v2283_v0 = vld [vmem:[%s5249_s11] sm:$0x3] }
 0x3d0   : > { %2286 = vperm.xlu1 %3151, %v2283_v0  }
 0x3de   : > { %v1385_v1 = vpop.f32.mrb[6].mxu0  ;;  %v1520_v2 = vpop.f32.mrb[4].mxu1 }
 0x3df   : > { %v3123_v3 = vpack.c.bf16 %v1520_v2, %v1385_v1  ;;  %v1387_v4 = vpop.f32.mrb[7].mxu0  ;;  %v1522_v5 = vpop.f32.mrb[5].mxu1 }
 0x3e0   : > { %v3121_v6 = vpack.c.bf16 %v1522_v5, %v1387_v4 }
 0x3e2   : > { %3122 = vmatprep.subr.bf16.mxu1 %v3121_v6 }
 0x3e3   : > { %3124 = vmatpush1.bf16.msra.mxu1 %v3123_v3 }
 0x41e   : > { %v1655_v7 = vpop.f32.mrb[8].mxu0 }
 0x41f   : > { %v1790_v8 = vpop.f32.mrb[6].mxu1  ;;  %v1657_v9 = vpop.f32.mrb[9].mxu0 }
 0x420   : > { %v3127_v11 = vpack.c.bf16 %v1790_v8, %v1655_v7  ;;  %v1792_v12 = vpop.f32.mrb[7].mxu1 }
 0x421   : > { %v3125_v13 = vpack.c.bf16 %v1792_v12, %v1657_v9 }
 0x423   : > { %3126 = vmatprep.subr.bf16.mxu1 %v3125_v13 }
 0x424   : > { %3128 = vmatpush1.bf16.msra.mxu1 %v3127_v11 }
 0x44b   : > { %v2205_v25 = vpop.permute.xlu1 %2204 }
 0x44f   : > { %v2287_v30 = vpop.permute.xlu1 %2286 }
 0x45e   : > { %v1925_v14 = vpop.f32.mrb[10].mxu0 }
 0x45f   : > { %v2060_v16 = vpop.f32.mrb[8].mxu1  ;;  %v1927_v17 = vpop.f32.mrb[11].mxu0 }
 0x460   : > { %v3131_v18 = vpack.c.bf16 %v2060_v16, %v1925_v14  ;;  %v2062_v19 = vpop.f32.mrb[9].mxu1 }
 0x461   : > { %v3129_v20 = vpack.c.bf16 %v2062_v19, %v1927_v17 }
 0x463   : > { %3130 = vmatprep.subr.bf16.mxu1 %v3129_v20 }
 0x464   : > { %3132 = vmatpush1.bf16.msra.mxu1 %v3131_v18 }
 0x49e   : > { %v2195_v21 = vpop.f32.mrb[12].mxu0 }
 0x49f   : > { %v2197_v22 = vpop.f32.mrb[13].mxu0 }
 0x4a0   : > { %2227 = vmatprep.subr.mxu1 %v2197_v22 }
 0x4a1   : > { %2228 = vmatpush1.msra.mxu1 %v2195_v21 }
 0x4a2   : > { %2463 = vmatmul.mubr.msk.f32.vlgmr.msra.gmra.mrb[10].mxu1 %vm2207_vm6, %v2200_v23 }
 0x575   : > { %v2277_v24 = vpop.f32.mrb[10].mxu1 }
 0x576   : > { %v2279_v26 = vpop.f32.mrb[11].mxu1  ;;  %v2278_v28 = vadd.f32 %v2277_v24, %v2205_v25 }
 0x577   : > { %v2280_v27 = vadd.f32 %v2279_v26, %v2205_v25 }
 0x579   : > { %2293 = vmatprep.subr.mxu0 %v2280_v27 }
 0x57a   : > { %2294 = vmatpush1.msra.mxu0 %v2278_v28 }
 0x57b   : > { %2464 = vmatmul.mubr.msk.f32.vlgmr.msra.gmra.mrb[14].mxu0 %vm2289_vm7, %v2282_v29 }
 0x64e   : > { %v2359_v31 = vpop.f32.mrb[14].mxu0 }
 0x64f   : > { %v2360_v32 = vadd.f32 %v2359_v31, %v2287_v30  ;;  %v2361_v33 = vpop.f32.mrb[15].mxu0 }
 0x650   : > { %v2362_v34 = vadd.f32 %v2361_v33, %v2287_v30 }
 0x652   : > { %v2366_v35 = vcombine.low %v2360_v32, %v2362_v34 }
 0x654   : > { %2465 = vst.sshfl [vmem:[%s430_s14] sm:$0x33 pattern:$0x76325410] %v2366_v35 }
 0x655 PF: > { %s22_s21 = sadd.s32 1, %s3158_s21  }
 0x656   : > { %p19_p4 = scmp.ge.s32.totalorder %s22_s21, 4  }
 0x658   :  { %21 = sbr.rel (!%p19_p4) target bundleno = 1 (0x1), region = 101 }

</bundles_post_ra>
